<compile_context>
chip_gen: v7x
topology: tpu7x:2x2x1
jax: 0.10.0
libtpu: 0.0.40
codegen_flags: <defaults>
</compile_context>

<pallas_src>
import math

import jax
import jax.numpy as jnp
from jax.experimental import pallas as pl
from jax.experimental.pallas import tpu as pltpu  # noqa: F401  (kept for TPU-specific tuning hooks)

# ---- config (mirrors the nn.Module config) ----------------------------------
IN_FEATURES = 4096      # fc_mask input
FC_OUT      = 128       # fc_mask output == LSTM input_size
INPUT_SIZE  = 128
HIDDEN_SIZE = 32
NUM_LAYERS  = 1         # single layer, unidirectional, proj_size = 0
BATCH       = 2
SEQ         = 8


# ---- fused fc_mask + LSTM kernel (single invocation, no grid) ----------------
def fused_fc_lstm_kernel(x_ref, h0_ref, c0_ref, w_ref, b_ref, whh_ref,
                         out_ref, hN_ref, cN_ref):
    B, H = h0_ref.shape
    S = out_ref.shape[1] // H

    # Folded projection for ALL timesteps: (B*S, 4096) @ (4096, 4H) + bias.
    # bf16 operands, f32 MXU accumulation.  PyTorch gate order [i, f, g, o].
    gates_x = (jnp.dot(x_ref[...].astype(jnp.bfloat16), w_ref[...],
                       preferred_element_type=jnp.float32)
               + b_ref[...])                                         # (B*S, 4H)
    gx = gates_x.reshape(B, S, 4 * H)                                # rows are (b, s)

    whh = whh_ref[...]                                               # (H, 4H)
    h = h0_ref[...]                                                  # (B, H)
    c = c0_ref[...]                                                  # (B, H)

    hs = []
    for t in range(S):  # static, fully unrolled serial recurrence
        g = gx[:, t, :] + jnp.dot(h, whh, preferred_element_type=jnp.float32)  # (B, 4H)
        # Two full-vreg EUP passes instead of four narrow 32-lane slices.
        sg = jax.nn.sigmoid(g)
        th = jnp.tanh(g)
        i_g = sg[:, 0:H]
        f_g = sg[:, H:2 * H]
        g_g = th[:, 2 * H:3 * H]
        o_g = sg[:, 3 * H:4 * H]
        c = f_g * c + i_g * g_g
        h = o_g * jnp.tanh(c)
        hs.append(h)

    # One lane-dense (B, S*H) = (2, 256) store instead of 8 masked 32-lane stores.
    out_ref[...] = jnp.concatenate(hs, axis=1).astype(out_ref.dtype)
    hN_ref[0] = h.astype(hN_ref.dtype)
    cN_ref[0] = c.astype(cN_ref.dtype)


# ---- module forward ----------------------------------------------------------
def customizable_lstm_forward(x, hidden, prep):
    """x: (B, S, 4096); hidden = (h0, c0), each (num_layers, B, H)."""
    B, S, _ = x.shape
    H = HIDDEN_SIZE
    h0, c0 = hidden

    out2d, hN, cN = pl.pallas_call(
        fused_fc_lstm_kernel,
        out_shape=(
            jax.ShapeDtypeStruct((B, S * H), jnp.float32),
            jax.ShapeDtypeStruct((NUM_LAYERS, B, H), jnp.float32),
            jax.ShapeDtypeStruct((NUM_LAYERS, B, H), jnp.float32),
        ),
        in_specs=[
            pl.BlockSpec((B * S, IN_FEATURES), lambda: (0, 0)),
            pl.BlockSpec((B, H), lambda: (0, 0)),
            pl.BlockSpec((B, H), lambda: (0, 0)),
            pl.BlockSpec((IN_FEATURES, 4 * H), lambda: (0, 0)),
            pl.BlockSpec((1, 4 * H), lambda: (0, 0)),
            pl.BlockSpec((H, 4 * H), lambda: (0, 0)),
        ],
        out_specs=(
            pl.BlockSpec((B, S * H), lambda: (0, 0)),
            pl.BlockSpec((NUM_LAYERS, B, H), lambda: (0, 0, 0)),
            pl.BlockSpec((NUM_LAYERS, B, H), lambda: (0, 0, 0)),
        ),
    )(
        x.reshape(B * S, IN_FEATURES),      # contiguous row-major reshape (free)
        h0[0], c0[0],
        prep["w_comb_bf16"], prep["b_comb"], prep["whh_t"],
    )
    output = out2d.reshape(B, S, H)         # (B, S*H) -> (B, S, H), free reshape
    return output, (hN, cN)


# ---- pure-JAX f32 reference for correctness check ----------------------------
def reference_forward(x, hidden, params):
    B, S, _ = x.shape
    h0, c0 = hidden
    H = HIDDEN_SIZE
    xm = x.reshape(B * S, IN_FEATURES) @ params["fc_w"] + params["fc_b"]
    x_seq = jnp.transpose(xm.reshape(B, S, FC_OUT), (1, 0, 2))

    def step(carry, x_t):
        h, c = carry
        gates = (x_t @ params["w_ih"].T + params["b_ih"]
                 + h @ params["w_hh"].T + params["b_hh"])
        i = jax.nn.sigmoid(gates[:, :H])
        f = jax.nn.sigmoid(gates[:, H:2 * H])
        g = jnp.tanh(gates[:, 2 * H:3 * H])
        o = jax.nn.sigmoid(gates[:, 3 * H:4 * H])
        c = f * c + i * g
        h = o * jnp.tanh(c)
        return (h, c), h

    (hN, cN), out_seq = jax.lax.scan(step, (h0[0], c0[0]), x_seq)
    return jnp.transpose(out_seq, (1, 0, 2)), (hN[None], cN[None])


# ---- deterministic parameter init (synthetic; no checkpoint load) -------------
def init_params(key):
    k1, k2, k3, k4, k5 = jax.random.split(key, 5)
    s = 1.0 / math.sqrt(HIDDEN_SIZE)
    return {
        # get_linear: weight ~ N(0, 0.01), bias = 0   (stored as (in, out))
        "fc_w": jax.random.normal(k1, (IN_FEATURES, FC_OUT), jnp.float32) * 0.01,
        "fc_b": jnp.zeros((FC_OUT,), jnp.float32),
        # nn.LSTM default-style uniform init, PyTorch gate order [i, f, g, o]
        "w_ih": jax.random.uniform(k2, (4 * HIDDEN_SIZE, INPUT_SIZE), jnp.float32, -s, s),
        "w_hh": jax.random.uniform(k3, (4 * HIDDEN_SIZE, HIDDEN_SIZE), jnp.float32, -s, s),
        "b_ih": jax.random.uniform(k4, (4 * HIDDEN_SIZE,), jnp.float32, -s, s),
        "b_hh": jax.random.uniform(k5, (4 * HIDDEN_SIZE,), jnp.float32, -s, s),
    }
    # TODO(synk): _initialize_weights() orthogonal init not reproduced bit-exactly;
    # deterministic synthetic init used instead (same shapes/semantics).


def prepare_params(p):
    """One-time kernel-ready layout: fold fc_mask into the LSTM input projection.

      gates_x = (x @ fc_w + fc_b) @ w_ih^T + b_ih + b_hh
              =  x @ (fc_w @ w_ih^T)  +  (fc_b @ w_ih^T + b_ih + b_hh)
    """
    w_comb = p["fc_w"] @ p["w_ih"].T                                  # (4096, 4H) f32
    b_comb = p["fc_b"] @ p["w_ih"].T + p["b_ih"] + p["b_hh"]          # (4H,)      f32
    return {
        "w_comb_bf16": w_comb.astype(jnp.bfloat16),                   # (4096, 128)
        "b_comb": b_comb.reshape(1, 4 * HIDDEN_SIZE).astype(jnp.float32),
        "whh_t": p["w_hh"].T.astype(jnp.float32),                     # (H, 4H)
    }


if __name__ == "__main__":
    key = jax.random.PRNGKey(0)
    kx, kp, kh, kc = jax.random.split(key, 4)
    raw = init_params(kp)
    prep = jax.tree_util.tree_map(jax.block_until_ready, prepare_params(raw))

    x = jax.random.normal(kx, (BATCH, SEQ, IN_FEATURES), jnp.float32)
    h0 = 0.1 * jax.random.normal(kh, (NUM_LAYERS, BATCH, HIDDEN_SIZE), jnp.float32)
    c0 = 0.1 * jax.random.normal(kc, (NUM_LAYERS, BATCH, HIDDEN_SIZE), jnp.float32)

    fwd = jax.jit(customizable_lstm_forward)
    output, (hN, cN) = fwd(x, (h0, c0), prep)
    jax.block_until_ready((output, hN, cN))

    # Reference is full f32; kernel uses a bf16 composed input-projection weight
    # -> slightly looser tolerance.
    ref_out, (ref_h, ref_c) = reference_forward(x, (h0, c0), raw)
    assert jnp.allclose(output, ref_out, atol=1e-2, rtol=1e-2)
    assert jnp.allclose(hN, ref_h, atol=1e-2, rtol=1e-2)
    assert jnp.allclose(cN, ref_c, atol=1e-2, rtol=1e-2)

    print("KERNEL_OK")
</pallas_src>

<mosaic_0001>
module attributes {stable_mosaic.version = 11 : i64} {
  func.func @fused_fc_lstm_kernel(%arg0: memref<16x4096xf32, #tpu.memory_space<vmem>>, %arg1: memref<2x32xf32, #tpu.memory_space<vmem>>, %arg2: memref<2x32xf32, #tpu.memory_space<vmem>>, %arg3: memref<4096x128xbf16, #tpu.memory_space<vmem>>, %arg4: memref<1x128xf32, #tpu.memory_space<vmem>>, %arg5: memref<32x128xf32, #tpu.memory_space<vmem>>, %arg6: memref<2x256xf32, #tpu.memory_space<vmem>>, %arg7: memref<1x2x32xf32, #tpu.memory_space<vmem>>, %arg8: memref<1x2x32xf32, #tpu.memory_space<vmem>>) attributes {dimension_semantics = [], scalar_prefetch = 0 : i64, scratch_operands = 0 : i64, tpu.core_type = #tpu.core_type<tc>} {
    %c0 = arith.constant 0 : index
    %c0_0 = arith.constant 0 : index
    %0 = vector.load %arg0[%c0, %c0_0] : memref<16x4096xf32, #tpu.memory_space<vmem>>, vector<16x4096xf32>
    %1 = arith.truncf %0 : vector<16x4096xf32> to vector<16x4096xbf16>
    %c0_1 = arith.constant 0 : index
    %c0_2 = arith.constant 0 : index
    %2 = vector.load %arg3[%c0_1, %c0_2] : memref<4096x128xbf16, #tpu.memory_space<vmem>>, vector<4096x128xbf16>
    %cst = arith.constant dense<0.000000e+00> : vector<16x128xf32>
    %3 = tpu.matmul %1, %2, %cst {dimension_numbers = #tpu.dot_dimension_numbers<[1], [0], [0], [1], [0, 0, 1, 1], [], []>} : vector<16x4096xbf16>, vector<4096x128xbf16>, vector<16x128xf32> -> vector<16x128xf32>
    %c0_3 = arith.constant 0 : index
    %c0_4 = arith.constant 0 : index
    %4 = vector.load %arg4[%c0_3, %c0_4] : memref<1x128xf32, #tpu.memory_space<vmem>>, vector<1x128xf32>
    %5 = vector.broadcast %4 : vector<1x128xf32> to vector<16x128xf32>
    %6 = arith.addf %3, %5 : vector<16x128xf32>
    %7 = vector.shape_cast %6 : vector<16x128xf32> to vector<2x8x128xf32>
    %c0_5 = arith.constant 0 : index
    %c0_6 = arith.constant 0 : index
    %8 = vector.load %arg5[%c0_5, %c0_6] : memref<32x128xf32, #tpu.memory_space<vmem>>, vector<32x128xf32>
    %c0_7 = arith.constant 0 : index
    %c0_8 = arith.constant 0 : index
    %9 = vector.load %arg1[%c0_7, %c0_8] : memref<2x32xf32, #tpu.memory_space<vmem>>, vector<2x32xf32>
    %c0_9 = arith.constant 0 : index
    %c0_10 = arith.constant 0 : index
    %10 = vector.load %arg2[%c0_9, %c0_10] : memref<2x32xf32, #tpu.memory_space<vmem>>, vector<2x32xf32>
    %11 = vector.extract_strided_slice %7 {offsets = [0, 0, 0], sizes = [2, 1, 128], strides = [1, 1, 1]} : vector<2x8x128xf32> to vector<2x1x128xf32>
    %12 = vector.shape_cast %11 : vector<2x1x128xf32> to vector<2x128xf32>
    %cst_11 = arith.constant dense<0.000000e+00> : vector<2x128xf32>
    %13 = tpu.matmul %9, %8, %cst_11 {dimension_numbers = #tpu.dot_dimension_numbers<[1], [0], [0], [1], [0, 0, 1, 1], [], []>} : vector<2x32xf32>, vector<32x128xf32>, vector<2x128xf32> -> vector<2x128xf32>
    %14 = arith.addf %12, %13 : vector<2x128xf32>
    %15 = arith.negf %14 : vector<2x128xf32>
    %16 = math.exp %15 : vector<2x128xf32>
    %cst_12 = arith.constant 1.000000e+00 : f32
    %17 = vector.broadcast %cst_12 : f32 to vector<2x128xf32>
    %18 = arith.addf %17, %16 : vector<2x128xf32>
    %19 = arith.divf %17, %18 : vector<2x128xf32>
    %20 = math.tanh %14 : vector<2x128xf32>
    %21 = vector.extract_strided_slice %19 {offsets = [0, 0], sizes = [2, 32], strides = [1, 1]} : vector<2x128xf32> to vector<2x32xf32>
    %22 = vector.extract_strided_slice %19 {offsets = [0, 32], sizes = [2, 32], strides = [1, 1]} : vector<2x128xf32> to vector<2x32xf32>
    %23 = vector.extract_strided_slice %20 {offsets = [0, 64], sizes = [2, 32], strides = [1, 1]} : vector<2x128xf32> to vector<2x32xf32>
    %24 = vector.extract_strided_slice %19 {offsets = [0, 96], sizes = [2, 32], strides = [1, 1]} : vector<2x128xf32> to vector<2x32xf32>
    %25 = arith.mulf %22, %10 : vector<2x32xf32>
    %26 = arith.mulf %21, %23 : vector<2x32xf32>
    %27 = arith.addf %25, %26 : vector<2x32xf32>
    %28 = math.tanh %27 : vector<2x32xf32>
    %29 = arith.mulf %24, %28 : vector<2x32xf32>
    %30 = vector.extract_strided_slice %7 {offsets = [0, 1, 0], sizes = [2, 1, 128], strides = [1, 1, 1]} : vector<2x8x128xf32> to vector<2x1x128xf32>
    %31 = vector.shape_cast %30 : vector<2x1x128xf32> to vector<2x128xf32>
    %cst_13 = arith.constant dense<0.000000e+00> : vector<2x128xf32>
    %32 = tpu.matmul %29, %8, %cst_13 {dimension_numbers = #tpu.dot_dimension_numbers<[1], [0], [0], [1], [0, 0, 1, 1], [], []>} : vector<2x32xf32>, vector<32x128xf32>, vector<2x128xf32> -> vector<2x128xf32>
    %33 = arith.addf %31, %32 : vector<2x128xf32>
    %34 = arith.negf %33 : vector<2x128xf32>
    %35 = math.exp %34 : vector<2x128xf32>
    %cst_14 = arith.constant 1.000000e+00 : f32
    %36 = vector.broadcast %cst_14 : f32 to vector<2x128xf32>
    %37 = arith.addf %36, %35 : vector<2x128xf32>
    %38 = arith.divf %36, %37 : vector<2x128xf32>
    %39 = math.tanh %33 : vector<2x128xf32>
    %40 = vector.extract_strided_slice %38 {offsets = [0, 0], sizes = [2, 32], strides = [1, 1]} : vector<2x128xf32> to vector<2x32xf32>
    %41 = vector.extract_strided_slice %38 {offsets = [0, 32], sizes = [2, 32], strides = [1, 1]} : vector<2x128xf32> to vector<2x32xf32>
    %42 = vector.extract_strided_slice %39 {offsets = [0, 64], sizes = [2, 32], strides = [1, 1]} : vector<2x128xf32> to vector<2x32xf32>
    %43 = vector.extract_strided_slice %38 {offsets = [0, 96], sizes = [2, 32], strides = [1, 1]} : vector<2x128xf32> to vector<2x32xf32>
    %44 = arith.mulf %41, %27 : vector<2x32xf32>
    %45 = arith.mulf %40, %42 : vector<2x32xf32>
    %46 = arith.addf %44, %45 : vector<2x32xf32>
    %47 = math.tanh %46 : vector<2x32xf32>
    %48 = arith.mulf %43, %47 : vector<2x32xf32>
    %49 = vector.extract_strided_slice %7 {offsets = [0, 2, 0], sizes = [2, 1, 128], strides = [1, 1, 1]} : vector<2x8x128xf32> to vector<2x1x128xf32>
    %50 = vector.shape_cast %49 : vector<2x1x128xf32> to vector<2x128xf32>
    %cst_15 = arith.constant dense<0.000000e+00> : vector<2x128xf32>
    %51 = tpu.matmul %48, %8, %cst_15 {dimension_numbers = #tpu.dot_dimension_numbers<[1], [0], [0], [1], [0, 0, 1, 1], [], []>} : vector<2x32xf32>, vector<32x128xf32>, vector<2x128xf32> -> vector<2x128xf32>
    %52 = arith.addf %50, %51 : vector<2x128xf32>
    %53 = arith.negf %52 : vector<2x128xf32>
    %54 = math.exp %53 : vector<2x128xf32>
    %cst_16 = arith.constant 1.000000e+00 : f32
    %55 = vector.broadcast %cst_16 : f32 to vector<2x128xf32>
    %56 = arith.addf %55, %54 : vector<2x128xf32>
    %57 = arith.divf %55, %56 : vector<2x128xf32>
    %58 = math.tanh %52 : vector<2x128xf32>
    %59 = vector.extract_strided_slice %57 {offsets = [0, 0], sizes = [2, 32], strides = [1, 1]} : vector<2x128xf32> to vector<2x32xf32>
    %60 = vector.extract_strided_slice %57 {offsets = [0, 32], sizes = [2, 32], strides = [1, 1]} : vector<2x128xf32> to vector<2x32xf32>
    %61 = vector.extract_strided_slice %58 {offsets = [0, 64], sizes = [2, 32], strides = [1, 1]} : vector<2x128xf32> to vector<2x32xf32>
    %62 = vector.extract_strided_slice %57 {offsets = [0, 96], sizes = [2, 32], strides = [1, 1]} : vector<2x128xf32> to vector<2x32xf32>
    %63 = arith.mulf %60, %46 : vector<2x32xf32>
    %64 = arith.mulf %59, %61 : vector<2x32xf32>
    %65 = arith.addf %63, %64 : vector<2x32xf32>
    %66 = math.tanh %65 : vector<2x32xf32>
    %67 = arith.mulf %62, %66 : vector<2x32xf32>
    %68 = vector.extract_strided_slice %7 {offsets = [0, 3, 0], sizes = [2, 1, 128], strides = [1, 1, 1]} : vector<2x8x128xf32> to vector<2x1x128xf32>
    %69 = vector.shape_cast %68 : vector<2x1x128xf32> to vector<2x128xf32>
    %cst_17 = arith.constant dense<0.000000e+00> : vector<2x128xf32>
    %70 = tpu.matmul %67, %8, %cst_17 {dimension_numbers = #tpu.dot_dimension_numbers<[1], [0], [0], [1], [0, 0, 1, 1], [], []>} : vector<2x32xf32>, vector<32x128xf32>, vector<2x128xf32> -> vector<2x128xf32>
    %71 = arith.addf %69, %70 : vector<2x128xf32>
    %72 = arith.negf %71 : vector<2x128xf32>
    %73 = math.exp %72 : vector<2x128xf32>
    %cst_18 = arith.constant 1.000000e+00 : f32
    %74 = vector.broadcast %cst_18 : f32 to vector<2x128xf32>
    %75 = arith.addf %74, %73 : vector<2x128xf32>
    %76 = arith.divf %74, %75 : vector<2x128xf32>
    %77 = math.tanh %71 : vector<2x128xf32>
    %78 = vector.extract_strided_slice %76 {offsets = [0, 0], sizes = [2, 32], strides = [1, 1]} : vector<2x128xf32> to vector<2x32xf32>
    %79 = vector.extract_strided_slice %76 {offsets = [0, 32], sizes = [2, 32], strides = [1, 1]} : vector<2x128xf32> to vector<2x32xf32>
    %80 = vector.extract_strided_slice %77 {offsets = [0, 64], sizes = [2, 32], strides = [1, 1]} : vector<2x128xf32> to vector<2x32xf32>
    %81 = vector.extract_strided_slice %76 {offsets = [0, 96], sizes = [2, 32], strides = [1, 1]} : vector<2x128xf32> to vector<2x32xf32>
    %82 = arith.mulf %79, %65 : vector<2x32xf32>
    %83 = arith.mulf %78, %80 : vector<2x32xf32>
    %84 = arith.addf %82, %83 : vector<2x32xf32>
    %85 = math.tanh %84 : vector<2x32xf32>
    %86 = arith.mulf %81, %85 : vector<2x32xf32>
    %87 = vector.extract_strided_slice %7 {offsets = [0, 4, 0], sizes = [2, 1, 128], strides = [1, 1, 1]} : vector<2x8x128xf32> to vector<2x1x128xf32>
    %88 = vector.shape_cast %87 : vector<2x1x128xf32> to vector<2x128xf32>
    %cst_19 = arith.constant dense<0.000000e+00> : vector<2x128xf32>
    %89 = tpu.matmul %86, %8, %cst_19 {dimension_numbers = #tpu.dot_dimension_numbers<[1], [0], [0], [1], [0, 0, 1, 1], [], []>} : vector<2x32xf32>, vector<32x128xf32>, vector<2x128xf32> -> vector<2x128xf32>
    %90 = arith.addf %88, %89 : vector<2x128xf32>
    %91 = arith.negf %90 : vector<2x128xf32>
    %92 = math.exp %91 : vector<2x128xf32>
    %cst_20 = arith.constant 1.000000e+00 : f32
    %93 = vector.broadcast %cst_20 : f32 to vector<2x128xf32>
    %94 = arith.addf %93, %92 : vector<2x128xf32>
    %95 = arith.divf %93, %94 : vector<2x128xf32>
    %96 = math.tanh %90 : vector<2x128xf32>
    %97 = vector.extract_strided_slice %95 {offsets = [0, 0], sizes = [2, 32], strides = [1, 1]} : vector<2x128xf32> to vector<2x32xf32>
    %98 = vector.extract_strided_slice %95 {offsets = [0, 32], sizes = [2, 32], strides = [1, 1]} : vector<2x128xf32> to vector<2x32xf32>
    %99 = vector.extract_strided_slice %96 {offsets = [0, 64], sizes = [2, 32], strides = [1, 1]} : vector<2x128xf32> to vector<2x32xf32>
    %100 = vector.extract_strided_slice %95 {offsets = [0, 96], sizes = [2, 32], strides = [1, 1]} : vector<2x128xf32> to vector<2x32xf32>
    %101 = arith.mulf %98, %84 : vector<2x32xf32>
    %102 = arith.mulf %97, %99 : vector<2x32xf32>
    %103 = arith.addf %101, %102 : vector<2x32xf32>
    %104 = math.tanh %103 : vector<2x32xf32>
    %105 = arith.mulf %100, %104 : vector<2x32xf32>
    %106 = vector.extract_strided_slice %7 {offsets = [0, 5, 0], sizes = [2, 1, 128], strides = [1, 1, 1]} : vector<2x8x128xf32> to vector<2x1x128xf32>
    %107 = vector.shape_cast %106 : vector<2x1x128xf32> to vector<2x128xf32>
    %cst_21 = arith.constant dense<0.000000e+00> : vector<2x128xf32>
    %108 = tpu.matmul %105, %8, %cst_21 {dimension_numbers = #tpu.dot_dimension_numbers<[1], [0], [0], [1], [0, 0, 1, 1], [], []>} : vector<2x32xf32>, vector<32x128xf32>, vector<2x128xf32> -> vector<2x128xf32>
    %109 = arith.addf %107, %108 : vector<2x128xf32>
    %110 = arith.negf %109 : vector<2x128xf32>
    %111 = math.exp %110 : vector<2x128xf32>
    %cst_22 = arith.constant 1.000000e+00 : f32
    %112 = vector.broadcast %cst_22 : f32 to vector<2x128xf32>
    %113 = arith.addf %112, %111 : vector<2x128xf32>
    %114 = arith.divf %112, %113 : vector<2x128xf32>
    %115 = math.tanh %109 : vector<2x128xf32>
    %116 = vector.extract_strided_slice %114 {offsets = [0, 0], sizes = [2, 32], strides = [1, 1]} : vector<2x128xf32> to vector<2x32xf32>
    %117 = vector.extract_strided_slice %114 {offsets = [0, 32], sizes = [2, 32], strides = [1, 1]} : vector<2x128xf32> to vector<2x32xf32>
    %118 = vector.extract_strided_slice %115 {offsets = [0, 64], sizes = [2, 32], strides = [1, 1]} : vector<2x128xf32> to vector<2x32xf32>
    %119 = vector.extract_strided_slice %114 {offsets = [0, 96], sizes = [2, 32], strides = [1, 1]} : vector<2x128xf32> to vector<2x32xf32>
    %120 = arith.mulf %117, %103 : vector<2x32xf32>
    %121 = arith.mulf %116, %118 : vector<2x32xf32>
    %122 = arith.addf %120, %121 : vector<2x32xf32>
    %123 = math.tanh %122 : vector<2x32xf32>
    %124 = arith.mulf %119, %123 : vector<2x32xf32>
    %125 = vector.extract_strided_slice %7 {offsets = [0, 6, 0], sizes = [2, 1, 128], strides = [1, 1, 1]} : vector<2x8x128xf32> to vector<2x1x128xf32>
    %126 = vector.shape_cast %125 : vector<2x1x128xf32> to vector<2x128xf32>
    %cst_23 = arith.constant dense<0.000000e+00> : vector<2x128xf32>
    %127 = tpu.matmul %124, %8, %cst_23 {dimension_numbers = #tpu.dot_dimension_numbers<[1], [0], [0], [1], [0, 0, 1, 1], [], []>} : vector<2x32xf32>, vector<32x128xf32>, vector<2x128xf32> -> vector<2x128xf32>
    %128 = arith.addf %126, %127 : vector<2x128xf32>
    %129 = arith.negf %128 : vector<2x128xf32>
    %130 = math.exp %129 : vector<2x128xf32>
    %cst_24 = arith.constant 1.000000e+00 : f32
    %131 = vector.broadcast %cst_24 : f32 to vector<2x128xf32>
    %132 = arith.addf %131, %130 : vector<2x128xf32>
    %133 = arith.divf %131, %132 : vector<2x128xf32>
    %134 = math.tanh %128 : vector<2x128xf32>
    %135 = vector.extract_strided_slice %133 {offsets = [0, 0], sizes = [2, 32], strides = [1, 1]} : vector<2x128xf32> to vector<2x32xf32>
    %136 = vector.extract_strided_slice %133 {offsets = [0, 32], sizes = [2, 32], strides = [1, 1]} : vector<2x128xf32> to vector<2x32xf32>
    %137 = vector.extract_strided_slice %134 {offsets = [0, 64], sizes = [2, 32], strides = [1, 1]} : vector<2x128xf32> to vector<2x32xf32>
    %138 = vector.extract_strided_slice %133 {offsets = [0, 96], sizes = [2, 32], strides = [1, 1]} : vector<2x128xf32> to vector<2x32xf32>
    %139 = arith.mulf %136, %122 : vector<2x32xf32>
    %140 = arith.mulf %135, %137 : vector<2x32xf32>
    %141 = arith.addf %139, %140 : vector<2x32xf32>
    %142 = math.tanh %141 : vector<2x32xf32>
    %143 = arith.mulf %138, %142 : vector<2x32xf32>
    %144 = vector.extract_strided_slice %7 {offsets = [0, 7, 0], sizes = [2, 1, 128], strides = [1, 1, 1]} : vector<2x8x128xf32> to vector<2x1x128xf32>
    %145 = vector.shape_cast %144 : vector<2x1x128xf32> to vector<2x128xf32>
    %cst_25 = arith.constant dense<0.000000e+00> : vector<2x128xf32>
    %146 = tpu.matmul %143, %8, %cst_25 {dimension_numbers = #tpu.dot_dimension_numbers<[1], [0], [0], [1], [0, 0, 1, 1], [], []>} : vector<2x32xf32>, vector<32x128xf32>, vector<2x128xf32> -> vector<2x128xf32>
    %147 = arith.addf %145, %146 : vector<2x128xf32>
    %148 = arith.negf %147 : vector<2x128xf32>
    %149 = math.exp %148 : vector<2x128xf32>
    %cst_26 = arith.constant 1.000000e+00 : f32
    %150 = vector.broadcast %cst_26 : f32 to vector<2x128xf32>
    %151 = arith.addf %150, %149 : vector<2x128xf32>
    %152 = arith.divf %150, %151 : vector<2x128xf32>
    %153 = math.tanh %147 : vector<2x128xf32>
    %154 = vector.extract_strided_slice %152 {offsets = [0, 0], sizes = [2, 32], strides = [1, 1]} : vector<2x128xf32> to vector<2x32xf32>
    %155 = vector.extract_strided_slice %152 {offsets = [0, 32], sizes = [2, 32], strides = [1, 1]} : vector<2x128xf32> to vector<2x32xf32>
    %156 = vector.extract_strided_slice %153 {offsets = [0, 64], sizes = [2, 32], strides = [1, 1]} : vector<2x128xf32> to vector<2x32xf32>
    %157 = vector.extract_strided_slice %152 {offsets = [0, 96], sizes = [2, 32], strides = [1, 1]} : vector<2x128xf32> to vector<2x32xf32>
    %158 = arith.mulf %155, %141 : vector<2x32xf32>
    %159 = arith.mulf %154, %156 : vector<2x32xf32>
    %160 = arith.addf %158, %159 : vector<2x32xf32>
    %161 = math.tanh %160 : vector<2x32xf32>
    %162 = arith.mulf %157, %161 : vector<2x32xf32>
    %163 = tpu.concatenate %29, %48, %67, %86, %105, %124, %143, %162 in 1 : vector<2x32xf32>, vector<2x32xf32>, vector<2x32xf32>, vector<2x32xf32>, vector<2x32xf32>, vector<2x32xf32>, vector<2x32xf32>, vector<2x32xf32> -> vector<2x256xf32>
    %c0_27 = arith.constant 0 : index
    %c0_28 = arith.constant 0 : index
    %164 = vector.load %arg6[%c0_27, %c0_28] : memref<2x256xf32, #tpu.memory_space<vmem>>, vector<2x256xf32>
    tpu.vector_store %arg6[%c0_27, %c0_28], %163 {strides = array<i32>} : memref<2x256xf32, #tpu.memory_space<vmem>>, vector<2x256xf32>,
    %c0_29 = arith.constant 0 : index
    %c0_30 = arith.constant 0 : index
    %c0_31 = arith.constant 0 : index
    %165 = vector.load %arg7[%c0_29, %c0_30, %c0_31] : memref<1x2x32xf32, #tpu.memory_space<vmem>>, vector<1x2x32xf32>
    %166 = vector.shape_cast %165 : vector<1x2x32xf32> to vector<2x32xf32>
    %167 = vector.shape_cast %162 : vector<2x32xf32> to vector<1x2x32xf32>
    tpu.vector_store %arg7[%c0_29, %c0_30, %c0_31], %167 {strides = array<i32>} : memref<1x2x32xf32, #tpu.memory_space<vmem>>, vector<1x2x32xf32>,
    %c0_32 = arith.constant 0 : index
    %c0_33 = arith.constant 0 : index
    %c0_34 = arith.constant 0 : index
    %168 = vector.load %arg8[%c0_32, %c0_33, %c0_34] : memref<1x2x32xf32, #tpu.memory_space<vmem>>, vector<1x2x32xf32>
    %169 = vector.shape_cast %168 : vector<1x2x32xf32> to vector<2x32xf32>
    %170 = vector.shape_cast %160 : vector<2x32xf32> to vector<1x2x32xf32>
    tpu.vector_store %arg8[%c0_32, %c0_33, %c0_34], %170 {strides = array<i32>} : memref<1x2x32xf32, #tpu.memory_space<vmem>>, vector<1x2x32xf32>,
    return
  }
}

</mosaic_0001>

<bundles_post_ra>
// kernel: customizable_lstm_forward.1
= control target key start
LH: loop header
LB: loop body
LE: loop exit
PB: predicated region body
PF: predicated region fallthrough
CT: control target
= control target key end

     0   :  { %14 = vsyncpa [#allocation3], 0  ;;  %s5740_s0 = inlined_call_operand.hbm [shape: f32[16,4096], index: 0, kind: input, shape index: {}]   ;;  %s5741_s1 = inlined_call_operand.vmem [shape: f32[2,32], index: 1, kind: input, shape index: {}]   ;;  %s5742_s2 = inlined_call_operand.vmem [shape: f32[2,32], index: 2, kind: input, shape index: {}]   ;;  %s5743_s3 = inlined_call_operand.hbm [shape: bf16[4096,128], index: 3, kind: input, shape index: {}]   ;;  %s5744_s4 = inlined_call_operand.vmem [shape: f32[1,128], index: 4, kind: input, shape index: {}]   ;;  %s5745_s5 = inlined_call_operand.hbm [shape: f32[32,128], index: 5, kind: input, shape index: {}]   ;;  %s5746_s6 = inlined_call_operand.vmem [shape: f32[2,256], index: 6, kind: output, shape index: {0}]   ;;  %s5747_s7 = inlined_call_operand.hbm [shape: f32[1,2,32], index: 7, kind: output, shape index: {1}]   ;;  %s5748_s8 = inlined_call_operand.hbm [shape: f32[1,2,32], index: 8, kind: output, shape index: {2}]  }
   0x1   :  { %15 = vsyncpa [#allocation6], 0 }
   0x2   :  { %16 = vsyncpa [#allocation4], 0 }
   0x3   :  { %17 = vsyncpa [#allocation10], 0  ;;  %s5422_s27 = smov [#allocation5]   ;;  %s5304_s9 = scalar_lea.hbm %s5743_s3, 32768 }
   0x4   :  { %s39_s28 = sshll.u32 %s5422_s27, 4  ;;  %p5305_p0 = scmp.ne.s32.totalorder %s5743_s3, %s5304_s9  ;;  %s40_s28 = int_to_ptr.vmem [resolvable:$true] %s39_s28 }
   0x5   :  { %p5308_p1 = scmp.lt.u32.totalorder %s5304_s9, %s5743_s3 }
   0x7   :  { %p5310_p2 = pnand %p5308_p1, %p5305_p0 }
   0x9   :  { %5313 = shalt.err (!%p5310_p2)
}
   0xa   :  { %s5314_s14 = scalar_lea.vmem %s40_s28, 32768  ;;  %p5319_p4 = scmp.lt.s32.totalorder %s40_s28, %s40_s28 }
   0xb   :  { %p5315_p3 = scmp.ne.s32.totalorder %s40_s28, %s5314_s14  ;;  %p5320_p5 = scmp.lt.s32.totalorder %s5314_s14, %s5314_s14 }
   0xd   :  { %p5321_p6 = por %p5320_p5, %p5319_p4 }
   0xf   :  { %p5322_p7 = pnand %p5321_p6, %p5315_p3 }
  0x11   :  { %5325 = shalt.err (!%p5322_p7)
}
  0x12   :  { %s5423_s15 = smov 64   ;;  %s5424_s16 = smov 4  }
  0x13   :  { %45 = dma.hbm_to_vmem [thread:$0]  %s5743_s3, 32768, %s40_s28, [#allocation6], %s5423_s15, %s5423_s15, %s5424_s16  }
  0x14   :  { %s5425_s19 = smov [#allocation2]   ;;  %s5326_s23 = scalar_lea.hbm %s5740_s0, 8192 }
  0x15   :  { %s23_s20 = sshll.u32 %s5425_s19, 4  ;;  %p5327_p8 = scmp.ne.s32.totalorder %s5740_s0, %s5326_s23  ;;  %s24_s20 = int_to_ptr.vmem [resolvable:$true] %s23_s20 }
  0x16   :  { %p5330_p9 = scmp.lt.u32.totalorder %s5326_s23, %s5740_s0 }
  0x18   :  { %p5332_p10 = pnand %p5330_p9, %p5327_p8 }
  0x1a   :  { %5335 = shalt.err (!%p5332_p10)
}
  0x1b   :  { %s5336_s29 = scalar_lea.vmem %s24_s20, 8192  ;;  %p5341_p12 = scmp.lt.s32.totalorder %s24_s20, %s24_s20 }
  0x1c   :  { %p5337_p11 = scmp.ne.s32.totalorder %s24_s20, %s5336_s29  ;;  %p5342_p13 = scmp.lt.s32.totalorder %s5336_s29, %s5336_s29 }
  0x1e   :  { %p5343_p0 = por %p5342_p13, %p5341_p12 }
  0x20   :  { %p5344_p1 = pnand %p5343_p0, %p5337_p11 }
  0x22   :  { %5347 = shalt.err (!%p5344_p1)
}
  0x23   :  { %s5426_s3 = smov 4096   ;;  %s5427_s28 = smov 256  }
  0x24   :  { %29 = dma.hbm_to_vmem [thread:$0]  %s5740_s0, 8192, %s24_s20, [#allocation3], %s5426_s3, %s5426_s3, %s5427_s28  }
  0x25   :  { %s5428_s10 = smov [#allocation7]   ;;  %s5348_s14 = scalar_lea.hbm %s5745_s5, 512 }
  0x26   :  { %s53_s11 = sshll.u32 %s5428_s10, 4  ;;  %p5349_p2 = scmp.ne.s32.totalorder %s5745_s5, %s5348_s14  ;;  %s54_s11 = int_to_ptr.vmem [resolvable:$true] %s53_s11 }
  0x27   :  { %p5352_p3 = scmp.lt.u32.totalorder %s5348_s14, %s5745_s5 }
  0x29   :  { %p5354_p4 = pnand %p5352_p3, %p5349_p2 }
  0x2b   :  { %5357 = shalt.err (!%p5354_p4)
}
  0x2c   :  { %s5358_s21 = scalar_lea.vmem %s54_s11, 512  ;;  %p5363_p6 = scmp.lt.s32.totalorder %s54_s11, %s54_s11 }
  0x2d   :  { %p5359_p5 = scmp.ne.s32.totalorder %s54_s11, %s5358_s21  ;;  %p5364_p7 = scmp.lt.s32.totalorder %s5358_s21, %s5358_s21 }
  0x2f   :  { %p5365_p8 = por %p5364_p7, %p5363_p6 }
  0x31   :  { %p5366_p9 = pnand %p5365_p8, %p5359_p5 }
  0x33   :  { %5369 = shalt.err (!%p5366_p9)
}
  0x34   :  { %s5429_s0 = smov 128   ;;  %s5430_s20 = smov 8  }
  0x35   :  { %59 = dma.hbm_to_vmem [thread:$0]  %s5745_s5, 512, %s54_s11, [#allocation6], %s5429_s0, %s5429_s0, %s5430_s20  }
  0x36   :  { %5414 = dma.done.wait [#allocation3], 8192  }
  0x37   :  { %5415 = vsyncadd [#allocation3], 4294959104 }
  0x38   :  { %5416 = dma.done.wait [#allocation6], 33280  }
  0x39   :  { %5417 = vsyncadd [#allocation6], 4294934016  ;;  %v4920_v0 = vld [vmem:[#allocation5 + $0x40] sm:$0xff]   ;;  %v4924_v4 = vld [vmem:[#allocation5 + $0x48] sm:$0xff]   ;;  %vm5432_vm0 = vmmov 0   ;;  %s5434_s26 = smov 32  }
  0x3a   :  { %v4921_v1 = vld [vmem:[#allocation5] sm:$0xff]   ;;  %4376 = vmatprep.subr.bf16.mxu0 %v4920_v0  ;;  %v4925_v5 = vld [vmem:[#allocation5 + $0x8] sm:$0xff]   ;;  %v4928_v8 = vld [vmem:[#allocation5 + $0x50] sm:$0xff]   ;;  %vm2883_vm1 = vcmask 261120   ;;  %vm3022_vm2 = vcmask 1041409   ;;  %vm4019_vm3 = vcmask 523264  }
  0x3b   :  { %v4922_v2 = vld [vmem:[#allocation5 + $0xc0] sm:$0xff]   ;;  %4377 = vmatpush3.bf16.msra.mxu0 %v4921_v1  ;;  %v4926_v6 = vld [vmem:[#allocation5 + $0xc8] sm:$0xff]   ;;  %v4929_v9 = vld [vmem:[#allocation5 + $0x10] sm:$0xff]   ;;  %vm4021_vm4 = vcmask 785408   ;;  %vm4045_vm5 = vcmask 261127   ;;  %s5436_s3 = smov [#allocation8]  }
  0x3c   :  { %v4923_v3 = vld [vmem:[#allocation5 + $0x80] sm:$0xff]   ;;  %4398 = vmatprep.subr.bf16.mxu1 %v4922_v2  ;;  %4378 = vmatprep.subr.bf16.mxu0 %v4924_v4  ;;  %v4927_v7 = vld [vmem:[#allocation5 + $0x88] sm:$0xff]   ;;  %v4930_v10 = vld [vmem:[#allocation5 + $0xd0] sm:$0xff]   ;;  %s4068_s28 = sshll.u32 %s5436_s3, 4  ;;  %vm4047_vm6 = vcmask 253952   ;;  %s5437_s30 = smov [#allocation9]   ;;  %s4069_s28 = int_to_ptr.vmem [resolvable:$true] %s4068_s28 }
  0x3d   :  { %4399 = vmatpush3.bf16.msra.mxu1 %v4923_v3  ;;  %v4931_v11 = vld [vmem:[#allocation5 + $0x90] sm:$0xff]   ;;  %v4932_v12 = vld [vmem:[#allocation5 + $0x58] sm:$0xff]   ;;  %v4936_v16 = vld [vmem:[#allocation5 + $0x60] sm:$0xff]   ;;  %s4078_s9 = sshll.u32 %s5437_s30, 4  ;;  %s5370_s10 = scalar_lea.vmem %s4069_s28, 32  ;;  %s4079_s9 = int_to_ptr.vmem [resolvable:$true] %s4078_s9 }
  0x3e   :  { %4400 = vmatprep.subr.bf16.mxu1 %v4926_v6  ;;  %v4933_v13 = vld [vmem:[#allocation5 + $0x18] sm:$0xff]   ;;  %v4937_v17 = vld [vmem:[#allocation5 + $0x20] sm:$0xff]   ;;  %v4940_v20 = vld [vmem:[#allocation5 + $0x68] sm:$0xff]   ;;  %p5371_p10 = scmp.ne.s32.totalorder %s4069_s28, %s5370_s10  ;;  %p5375_p11 = scmp.lt.s32.totalorder %s4069_s28, %s4069_s28 }
  0x3f   :  { %4379 = vmatpush3.bf16.msra.mxu0 %v4925_v5  ;;  %v4934_v14 = vld [vmem:[#allocation5 + $0xd8] sm:$0xff]   ;;  %v4938_v18 = vld [vmem:[#allocation5 + $0xe0] sm:$0xff]   ;;  %v4941_v21 = vld [vmem:[#allocation5 + $0x28] sm:$0xff]   ;;  %p5376_p12 = scmp.lt.s32.totalorder %s5370_s10, %s5370_s10 }
  0x40   :  { %4380 = vmatprep.subr.bf16.mxu0 %v4928_v8  ;;  %v4935_v15 = vld [vmem:[#allocation5 + $0x98] sm:$0xff]   ;;  %v4939_v19 = vld [vmem:[#allocation5 + $0xa0] sm:$0xff]   ;;  %v4942_v22 = vld [vmem:[#allocation5 + $0xe8] sm:$0xff]  }
  0x41   :  { %4401 = vmatpush3.bf16.msra.mxu1 %v4927_v7  ;;  %v4943_v23 = vld [vmem:[#allocation5 + $0xa8] sm:$0xff]   ;;  %v4944_v24 = vld [vmem:[#allocation5 + $0x70] sm:$0xff]   ;;  %v4948_v28 = vld [vmem:[#allocation5 + $0x78] sm:$0xff]   ;;  %p5377_p13 = por %p5376_p12, %p5375_p11 }
  0x42   :  { %4402 = vmatprep.subr.bf16.mxu1 %v4930_v10  ;;  %v4945_v25 = vld [vmem:[#allocation5 + $0x30] sm:$0xff]   ;;  %v4949_v29 = vld [vmem:[#allocation5 + $0x38] sm:$0xff]   ;;  %v71_v32 = vld [vmem:[#allocation2 + $0x8] sm:$0xff] }
  0x43   :  { %4381 = vmatpush3.bf16.msra.mxu0 %v4929_v9  ;;  %v4946_v26 = vld [vmem:[#allocation5 + $0xf0] sm:$0xff]   ;;  %v4950_v30 = vld [vmem:[#allocation5 + $0xf8] sm:$0xff]   ;;  %v103_v33 = vld [vmem:[#allocation2 + $0x108] sm:$0xff]  ;;  %p5378_p0 = pnand %p5377_p13, %p5371_p10 }
  0x44   :  { %4382 = vmatprep.subr.bf16.mxu0 %v4932_v12  ;;  %v4947_v27 = vld [vmem:[#allocation5 + $0xb0] sm:$0xff]   ;;  %v4951_v31 = vld [vmem:[#allocation5 + $0xb8] sm:$0xff]   ;;  %v70_v34 = vld [vmem:[#allocation2] sm:$0xff]  ;;  %v135_v35 = vpack.c.bf16 %v103_v33, %v71_v32 }
  0x45   :  { %4403 = vmatpush3.bf16.msra.mxu1 %v4931_v11  ;;  %v102_v36 = vld [vmem:[#allocation2 + $0x100] sm:$0xff]  ;;  %v73_v39 = vld [vmem:[#allocation2 + $0x18] sm:$0xff]  ;;  %v72_v44 = vld [vmem:[#allocation2 + $0x10] sm:$0xff] }
  0x46   :  { %4404 = vmatprep.subr.bf16.mxu1 %v4934_v14  ;;  %v134_v37 = vpack.c.bf16 %v102_v36, %v70_v34  ;;  %v4952_v38 = vld [vmem:[#allocation5 + $0x140] sm:$0xff]   ;;  %v105_v40 = vld [vmem:[#allocation2 + $0x118] sm:$0xff]  ;;  %2253 = vmatprep.mubr.bf16.mxu0 %v135_v35  ;;  %v104_v45 = vld [vmem:[#allocation2 + $0x110] sm:$0xff] }
  0x47   :  { %4383 = vmatpush3.bf16.msra.mxu0 %v4933_v13  ;;  %v137_v41 = vpack.c.bf16 %v105_v40, %v73_v39  ;;  %v4953_v42 = vld [vmem:[#allocation5 + $0x100] sm:$0xff]   ;;  %v136_v46 = vpack.c.bf16 %v104_v45, %v72_v44  ;;  %v4956_v48 = vld [vmem:[#allocation5 + $0x148] sm:$0xff]   ;;  %v4960_v52 = vld [vmem:[#allocation5 + $0x150] sm:$0xff]  }
  0x48   :  { %4384 = vmatprep.subr.bf16.mxu0 %v4936_v16  ;;  %v4954_v43 = vld [vmem:[#allocation5 + $0x1c0] sm:$0xff]   ;;  %v4957_v49 = vld [vmem:[#allocation5 + $0x108] sm:$0xff]   ;;  %v4961_v53 = vld [vmem:[#allocation5 + $0x110] sm:$0xff]  }
  0x49   :  { %4405 = vmatpush3.bf16.msra.mxu1 %v4935_v15  ;;  %2294 = vmatprep.mubr.bf16.mxu1 %v137_v41  ;;  %v4955_v47 = vld [vmem:[#allocation5 + $0x180] sm:$0xff]   ;;  %v4958_v50 = vld [vmem:[#allocation5 + $0x1c8] sm:$0xff]   ;;  %v4962_v54 = vld [vmem:[#allocation5 + $0x1d0] sm:$0xff]  }
  0x4a   :  { %4406 = vmatprep.subr.bf16.mxu1 %v4938_v18  ;;  %v4959_v51 = vld [vmem:[#allocation5 + $0x188] sm:$0xff]   ;;  %v4963_v55 = vld [vmem:[#allocation5 + $0x190] sm:$0xff]   ;;  %v4964_v56 = vld [vmem:[#allocation5 + $0x158] sm:$0xff]  }
  0x4b   :  { %4385 = vmatpush3.bf16.msra.mxu0 %v4937_v17  ;;  %v4965_v57 = vld [vmem:[#allocation5 + $0x118] sm:$0xff]   ;;  %v4968_v60 = vld [vmem:[#allocation5 + $0x160] sm:$0xff]   ;;  %v4972_v0 = vld [vmem:[#allocation5 + $0x168] sm:$0xff]  }
  0x4c   :  { %4386 = vmatprep.subr.bf16.mxu0 %v4940_v20  ;;  %v4966_v58 = vld [vmem:[#allocation5 + $0x1d8] sm:$0xff]   ;;  %v4969_v61 = vld [vmem:[#allocation5 + $0x120] sm:$0xff]   ;;  %v4973_v1 = vld [vmem:[#allocation5 + $0x128] sm:$0xff]  }
  0x4d   :  { %4407 = vmatpush3.bf16.msra.mxu1 %v4939_v19  ;;  %v4967_v59 = vld [vmem:[#allocation5 + $0x198] sm:$0xff]   ;;  %v4970_v62 = vld [vmem:[#allocation5 + $0x1e0] sm:$0xff]   ;;  %v4974_v2 = vld [vmem:[#allocation5 + $0x1e8] sm:$0xff]  }
  0x4e   :  { %4408 = vmatprep.subr.bf16.mxu1 %v4942_v22  ;;  %v4971_v63 = vld [vmem:[#allocation5 + $0x1a0] sm:$0xff]   ;;  %v4975_v3 = vld [vmem:[#allocation5 + $0x1a8] sm:$0xff]   ;;  %v4976_v4 = vld [vmem:[#allocation5 + $0x170] sm:$0xff]  }
  0x4f   :  { %4387 = vmatpush3.bf16.msra.mxu0 %v4941_v21  ;;  %v4977_v5 = vld [vmem:[#allocation5 + $0x130] sm:$0xff]   ;;  %v4980_v8 = vld [vmem:[#allocation5 + $0x178] sm:$0xff]   ;;  %v75_v12 = vld [vmem:[#allocation2 + $0x28] sm:$0xff] }
  0x50   :  { %4388 = vmatprep.subr.bf16.mxu0 %v4944_v24  ;;  %v4978_v6 = vld [vmem:[#allocation5 + $0x1f0] sm:$0xff]   ;;  %v4981_v9 = vld [vmem:[#allocation5 + $0x138] sm:$0xff]   ;;  %v107_v13 = vld [vmem:[#allocation2 + $0x128] sm:$0xff] }
  0x51   :  { %4409 = vmatpush3.bf16.msra.mxu1 %v4943_v23  ;;  %v4979_v7 = vld [vmem:[#allocation5 + $0x1b0] sm:$0xff]   ;;  %v4982_v10 = vld [vmem:[#allocation5 + $0x1f8] sm:$0xff]   ;;  %v74_v14 = vld [vmem:[#allocation2 + $0x20] sm:$0xff]  ;;  %v139_v16 = vpack.c.bf16 %v107_v13, %v75_v12 }
  0x52   :  { %4410 = vmatprep.subr.bf16.mxu1 %v4946_v26  ;;  %v4983_v11 = vld [vmem:[#allocation5 + $0x1b8] sm:$0xff]   ;;  %v106_v15 = vld [vmem:[#allocation2 + $0x120] sm:$0xff]  ;;  %v76_v24 = vld [vmem:[#allocation2 + $0x30] sm:$0xff] }
  0x53   :  { %4389 = vmatpush3.bf16.msra.mxu0 %v4945_v25  ;;  %v138_v17 = vpack.c.bf16 %v106_v15, %v74_v14  ;;  %v4984_v18 = vld [vmem:[#allocation5 + $0x240] sm:$0xff]   ;;  %v77_v19 = vld [vmem:[#allocation2 + $0x38] sm:$0xff]  ;;  %v108_v25 = vld [vmem:[#allocation2 + $0x130] sm:$0xff] }
  0x54   :  { %4390 = vmatprep.subr.bf16.mxu0 %v4948_v28  ;;  %v109_v20 = vld [vmem:[#allocation2 + $0x138] sm:$0xff]  ;;  %v4985_v22 = vld [vmem:[#allocation5 + $0x200] sm:$0xff]   ;;  %v140_v26 = vpack.c.bf16 %v108_v25, %v76_v24  ;;  %v4988_v28 = vld [vmem:[#allocation5 + $0x248] sm:$0xff]  }
  0x55   :  { %4411 = vmatpush3.bf16.msra.mxu1 %v4947_v27  ;;  %v141_v21 = vpack.c.bf16 %v109_v20, %v77_v19  ;;  %v4986_v23 = vld [vmem:[#allocation5 + $0x2c0] sm:$0xff]   ;;  %v4992_v32 = vld [vmem:[#allocation5 + $0x250] sm:$0xff]   ;;  %v4996_v36 = vld [vmem:[#allocation5 + $0x258] sm:$0xff]  }
  0x56   :  { %4412 = vmatprep.subr.bf16.mxu1 %v4950_v30  ;;  %v4987_v27 = vld [vmem:[#allocation5 + $0x280] sm:$0xff]   ;;  %v4990_v30 = vld [vmem:[#allocation5 + $0x2c8] sm:$0xff]   ;;  %v4993_v33 = vld [vmem:[#allocation5 + $0x210] sm:$0xff]  }
  0x57   :  { %4391 = vmatpush3.bf16.msra.mxu0 %v4949_v29  ;;  %v4989_v29 = vld [vmem:[#allocation5 + $0x208] sm:$0xff]   ;;  %v4994_v34 = vld [vmem:[#allocation5 + $0x2d0] sm:$0xff]   ;;  %v4999_v39 = vld [vmem:[#allocation5 + $0x298] sm:$0xff]  }
  0x58   :  { %4420 = vmatprep.subr.bf16.mxu0 %v4952_v38  ;;  %v4995_v35 = vld [vmem:[#allocation5 + $0x290] sm:$0xff]   ;;  %v4998_v38 = vld [vmem:[#allocation5 + $0x2d8] sm:$0xff]   ;;  %v5000_v40 = vld [vmem:[#allocation5 + $0x260] sm:$0xff]  }
  0x59   :  { %4413 = vmatpush3.bf16.msra.mxu1 %v4951_v31  ;;  %v4991_v31 = vld [vmem:[#allocation5 + $0x288] sm:$0xff]   ;;  %v5001_v41 = vld [vmem:[#allocation5 + $0x220] sm:$0xff]   ;;  %v5024_v12 = vld [vmem:[#allocation5 + $0x350] sm:$0xff]  }
  0x5a   :  { %2254 = vmatmul.mubr.bf16.vlgmr.msra.gmra.mrb[0].mxu0 %v134_v37  ;;  %4442 = vmatprep.subr.bf16.mxu1 %v4954_v43  ;;  %v4997_v37 = vld [vmem:[#allocation5 + $0x218] sm:$0xff]   ;;  %v5003_v43 = vld [vmem:[#allocation5 + $0x2a0] sm:$0xff]   ;;  %v5004_v44 = vld [vmem:[#allocation5 + $0x268] sm:$0xff]  }
  0x5b   :  { %4421 = vmatpush3.bf16.msra.mxu0 %v4953_v42  ;;  %2335 = vmatprep.mubr.bf16.mxu0 %v139_v16  ;;  %v5002_v42 = vld [vmem:[#allocation5 + $0x2e0] sm:$0xff]   ;;  %v5005_v45 = vld [vmem:[#allocation5 + $0x228] sm:$0xff]   ;;  %v5025_v13 = vld [vmem:[#allocation5 + $0x310] sm:$0xff]  }
  0x5c   :  { %2295 = vmatmul.mubr.bf16.vlgmr.msra.gmra.mrb[0].mxu1 %v136_v46  ;;  %4422 = vmatprep.subr.bf16.mxu0 %v4956_v48  ;;  %v5006_v46 = vld [vmem:[#allocation5 + $0x2e8] sm:$0xff]   ;;  %v5008_v48 = vld [vmem:[#allocation5 + $0x270] sm:$0xff]   ;;  %v5028_v16 = vld [vmem:[#allocation5 + $0x358] sm:$0xff]  }
  0x5d   :  { %4443 = vmatpush3.bf16.msra.mxu1 %v4955_v47  ;;  %2376 = vmatprep.mubr.bf16.mxu1 %v141_v21  ;;  %v5007_v47 = vld [vmem:[#allocation5 + $0x2a8] sm:$0xff]   ;;  %v5026_v14 = vld [vmem:[#allocation5 + $0x3d0] sm:$0xff]   ;;  %v5031_v19 = vld [vmem:[#allocation5 + $0x398] sm:$0xff]  }
  0x5e   :  { %4444 = vmatprep.subr.bf16.mxu1 %v4958_v50  ;;  %v5010_v50 = vld [vmem:[#allocation5 + $0x2f0] sm:$0xff]   ;;  %v5032_v20 = vld [vmem:[#allocation5 + $0x360] sm:$0xff]   ;;  %v5036_v24 = vld [vmem:[#allocation5 + $0x368] sm:$0xff]  }
  0x5f   :  { %4423 = vmatpush3.bf16.msra.mxu0 %v4957_v49  ;;  %v5009_v49 = vld [vmem:[#allocation5 + $0x230] sm:$0xff]   ;;  %v5033_v21 = vld [vmem:[#allocation5 + $0x320] sm:$0xff]   ;;  %v5037_v25 = vld [vmem:[#allocation5 + $0x328] sm:$0xff]  }
  0x60   :  { %4424 = vmatprep.subr.bf16.mxu0 %v4960_v52  ;;  %v5012_v52 = vld [vmem:[#allocation5 + $0x278] sm:$0xff]   ;;  %v5027_v15 = vld [vmem:[#allocation5 + $0x390] sm:$0xff]  }
  0x61   :  { %4445 = vmatpush3.bf16.msra.mxu1 %v4959_v51  ;;  %v5011_v51 = vld [vmem:[#allocation5 + $0x2b0] sm:$0xff]  }
  0x62   :  { %4446 = vmatprep.subr.bf16.mxu1 %v4962_v54  ;;  %v5014_v54 = vld [vmem:[#allocation5 + $0x2f8] sm:$0xff]  }
  0x63   :  { %4425 = vmatpush3.bf16.msra.mxu0 %v4961_v53  ;;  %v5013_v53 = vld [vmem:[#allocation5 + $0x238] sm:$0xff]  }
  0x64   :  { %4426 = vmatprep.subr.bf16.mxu0 %v4964_v56  ;;  %v79_v56 = vld [vmem:[#allocation2 + $0x48] sm:$0xff] }
  0x65   :  { %4447 = vmatpush3.bf16.msra.mxu1 %v4963_v55  ;;  %v5015_v55 = vld [vmem:[#allocation5 + $0x2b8] sm:$0xff]  }
  0x66   :  { %4448 = vmatprep.subr.bf16.mxu1 %v4966_v58 }
  0x67   :  { %4427 = vmatpush3.bf16.msra.mxu0 %v4965_v57  ;;  %v111_v57 = vld [vmem:[#allocation2 + $0x148] sm:$0xff] }
  0x68   :  { %4428 = vmatprep.subr.bf16.mxu0 %v4968_v60  ;;  %v143_v58 = vpack.c.bf16 %v111_v57, %v79_v56  ;;  %v110_v60 = vld [vmem:[#allocation2 + $0x140] sm:$0xff]  ;;  %v5056_v56 = vld [vmem:[#allocation5 + $0x450] sm:$0xff]  }
  0x69   :  { %4449 = vmatpush3.bf16.msra.mxu1 %v4967_v59  ;;  %v78_v59 = vld [vmem:[#allocation2 + $0x40] sm:$0xff]  ;;  %v5057_v57 = vld [vmem:[#allocation5 + $0x410] sm:$0xff]  }
  0x6a   :  { %4450 = vmatprep.subr.bf16.mxu1 %v4970_v62  ;;  %v5016_v62 = vld [vmem:[#allocation5 + $0x340] sm:$0xff]  }
  0x6b   :  { %4429 = vmatpush3.bf16.msra.mxu0 %v4969_v61  ;;  %v142_v61 = vpack.c.bf16 %v110_v60, %v78_v59  ;;  %v5059_v59 = vld [vmem:[#allocation5 + $0x490] sm:$0xff]   ;;  %v5060_v60 = vld [vmem:[#allocation5 + $0x458] sm:$0xff]  }
  0x6c   :  { %4430 = vmatprep.subr.bf16.mxu0 %v4972_v0  ;;  %v113_v0 = vld [vmem:[#allocation2 + $0x158] sm:$0xff] }
  0x6d   :  { %4451 = vmatpush3.bf16.msra.mxu1 %v4971_v63  ;;  %v81_v63 = vld [vmem:[#allocation2 + $0x58] sm:$0xff] }
  0x6e   :  { %4452 = vmatprep.subr.bf16.mxu1 %v4974_v2  ;;  %v5017_v2 = vld [vmem:[#allocation5 + $0x300] sm:$0xff]  }
  0x6f   :  { %4431 = vmatpush3.bf16.msra.mxu0 %v4973_v1  ;;  %v145_v1 = vpack.c.bf16 %v113_v0, %v81_v63  ;;  %v5063_v63 = vld [vmem:[#allocation5 + $0x498] sm:$0xff]   ;;  %v5064_v0 = vld [vmem:[#allocation5 + $0x460] sm:$0xff]  }
  0x70   :  { %4432 = vmatprep.subr.bf16.mxu0 %v4976_v4  ;;  %v80_v4 = vld [vmem:[#allocation2 + $0x50] sm:$0xff] }
  0x71   :  { %4453 = vmatpush3.bf16.msra.mxu1 %v4975_v3  ;;  %v5018_v3 = vld [vmem:[#allocation5 + $0x3c0] sm:$0xff]  }
  0x72   :  { %4454 = vmatprep.subr.bf16.mxu1 %v4978_v6 }
  0x73   :  { %4433 = vmatpush3.bf16.msra.mxu0 %v4977_v5  ;;  %v112_v5 = vld [vmem:[#allocation2 + $0x150] sm:$0xff] }
  0x74   :  { %4434 = vmatprep.subr.bf16.mxu0 %v4980_v8  ;;  %v144_v6 = vpack.c.bf16 %v112_v5, %v80_v4  ;;  %v5020_v8 = vld [vmem:[#allocation5 + $0x348] sm:$0xff]  }
  0x75   :  { %4455 = vmatpush3.bf16.msra.mxu1 %v4979_v7  ;;  %v5019_v7 = vld [vmem:[#allocation5 + $0x380] sm:$0xff]   ;;  %v5068_v4 = vld [vmem:[#allocation5 + $0x468] sm:$0xff]  }
  0x76   :  { %4456 = vmatprep.subr.bf16.mxu1 %v4982_v10  ;;  %v5022_v10 = vld [vmem:[#allocation5 + $0x3c8] sm:$0xff]  }
  0x77   :  { %4435 = vmatpush3.bf16.msra.mxu0 %v4981_v9  ;;  %v5021_v9 = vld [vmem:[#allocation5 + $0x308] sm:$0xff]  }
  0x78   :  { %4464 = vmatprep.subr.bf16.mxu0 %v4984_v18  ;;  %v5030_v18 = vld [vmem:[#allocation5 + $0x3d8] sm:$0xff]   ;;  %v5069_v5 = vld [vmem:[#allocation5 + $0x428] sm:$0xff]  }
  0x79   :  { %4457 = vmatpush3.bf16.msra.mxu1 %v4983_v11  ;;  %v5023_v11 = vld [vmem:[#allocation5 + $0x388] sm:$0xff]  }
  0x7a   :  { %2336 = vmatmul.mubr.bf16.vlgmr.msra.gmra.mrb[4].mxu0 %v138_v17  ;;  %4486 = vmatprep.subr.bf16.mxu1 %v4986_v23  ;;  %v5029_v17 = vld [vmem:[#allocation5 + $0x318] sm:$0xff]   ;;  %v5035_v23 = vld [vmem:[#allocation5 + $0x3a0] sm:$0xff]  }
  0x7b   :  { %4465 = vmatpush3.bf16.msra.mxu0 %v4985_v22  ;;  %2417 = vmatprep.mubr.bf16.mxu0 %v143_v58  ;;  %v5034_v22 = vld [vmem:[#allocation5 + $0x3e0] sm:$0xff]   ;;  %v5058_v58 = vld [vmem:[#allocation5 + $0x4d0] sm:$0xff]  }
  0x7c   :  { %2377 = vmatmul.mubr.bf16.vlgmr.msra.gmra.mrb[4].mxu1 %v140_v26  ;;  %4466 = vmatprep.subr.bf16.mxu0 %v4988_v28  ;;  %v5038_v26 = vld [vmem:[#allocation5 + $0x3e8] sm:$0xff]   ;;  %v5040_v28 = vld [vmem:[#allocation5 + $0x370] sm:$0xff]  }
  0x7d   :  { %4487 = vmatpush3.bf16.msra.mxu1 %v4987_v27  ;;  %2458 = vmatprep.mubr.bf16.mxu1 %v145_v1  ;;  %v5039_v27 = vld [vmem:[#allocation5 + $0x3a8] sm:$0xff]   ;;  %v5065_v1 = vld [vmem:[#allocation5 + $0x420] sm:$0xff]  }
  0x7e   :  { %4488 = vmatprep.subr.bf16.mxu1 %v4990_v30  ;;  %v5042_v30 = vld [vmem:[#allocation5 + $0x3f0] sm:$0xff]  }
  0x7f   :  { %4467 = vmatpush3.bf16.msra.mxu0 %v4989_v29  ;;  %v5041_v29 = vld [vmem:[#allocation5 + $0x330] sm:$0xff]  }
  0x80   :  { %4468 = vmatprep.subr.bf16.mxu0 %v4992_v32  ;;  %v5044_v32 = vld [vmem:[#allocation5 + $0x378] sm:$0xff]  }
  0x81   :  { %4489 = vmatpush3.bf16.msra.mxu1 %v4991_v31  ;;  %v5043_v31 = vld [vmem:[#allocation5 + $0x3b0] sm:$0xff]  }
  0x82   :  { %4490 = vmatprep.subr.bf16.mxu1 %v4994_v34  ;;  %v5046_v34 = vld [vmem:[#allocation5 + $0x3f8] sm:$0xff]  }
  0x83   :  { %4469 = vmatpush3.bf16.msra.mxu0 %v4993_v33  ;;  %v5045_v33 = vld [vmem:[#allocation5 + $0x338] sm:$0xff]  }
  0x84   :  { %4470 = vmatprep.subr.bf16.mxu0 %v4996_v36  ;;  %v83_v36 = vld [vmem:[#allocation2 + $0x68] sm:$0xff] }
  0x85   :  { %4491 = vmatpush3.bf16.msra.mxu1 %v4995_v35  ;;  %v5047_v35 = vld [vmem:[#allocation5 + $0x3b8] sm:$0xff]  }
  0x86   :  { %4492 = vmatprep.subr.bf16.mxu1 %v4998_v38  ;;  %v82_v38 = vld [vmem:[#allocation2 + $0x60] sm:$0xff] }
  0x87   :  { %4471 = vmatpush3.bf16.msra.mxu0 %v4997_v37  ;;  %v115_v37 = vld [vmem:[#allocation2 + $0x168] sm:$0xff] }
  0x88   :  { %4472 = vmatprep.subr.bf16.mxu0 %v5000_v40  ;;  %v114_v40 = vld [vmem:[#allocation2 + $0x160] sm:$0xff] }
  0x89   :  { %4493 = vmatpush3.bf16.msra.mxu1 %v4999_v39  ;;  %v147_v39 = vpack.c.bf16 %v115_v37, %v83_v36  ;;  %v5088_v36 = vld [vmem:[#allocation5 + $0x550] sm:$0xff]  }
  0x8a   :  { %4494 = vmatprep.subr.bf16.mxu1 %v5002_v42  ;;  %v5048_v42 = vld [vmem:[#allocation5 + $0x440] sm:$0xff]   ;;  %v5089_v37 = vld [vmem:[#allocation5 + $0x510] sm:$0xff]  }
  0x8b   :  { %4473 = vmatpush3.bf16.msra.mxu0 %v5001_v41  ;;  %v146_v41 = vpack.c.bf16 %v114_v40, %v82_v38  ;;  %v5090_v38 = vld [vmem:[#allocation5 + $0x5d0] sm:$0xff]   ;;  %v5092_v40 = vld [vmem:[#allocation5 + $0x558] sm:$0xff]  }
  0x8c   :  { %4474 = vmatprep.subr.bf16.mxu0 %v5004_v44  ;;  %v117_v44 = vld [vmem:[#allocation2 + $0x178] sm:$0xff] }
  0x8d   :  { %4495 = vmatpush3.bf16.msra.mxu1 %v5003_v43  ;;  %v85_v43 = vld [vmem:[#allocation2 + $0x78] sm:$0xff] }
  0x8e   :  { %4496 = vmatprep.subr.bf16.mxu1 %v5006_v46  ;;  %v5049_v46 = vld [vmem:[#allocation5 + $0x400] sm:$0xff]  }
  0x8f   :  { %4475 = vmatpush3.bf16.msra.mxu0 %v5005_v45  ;;  %v149_v45 = vpack.c.bf16 %v117_v44, %v85_v43  ;;  %v5095_v43 = vld [vmem:[#allocation5 + $0x598] sm:$0xff]   ;;  %v5096_v44 = vld [vmem:[#allocation5 + $0x560] sm:$0xff]  }
  0x90   :  { %4476 = vmatprep.subr.bf16.mxu0 %v5008_v48  ;;  %v84_v48 = vld [vmem:[#allocation2 + $0x70] sm:$0xff] }
  0x91   :  { %4497 = vmatpush3.bf16.msra.mxu1 %v5007_v47  ;;  %v5050_v47 = vld [vmem:[#allocation5 + $0x4c0] sm:$0xff]  }
  0x92   :  { %4498 = vmatprep.subr.bf16.mxu1 %v5010_v50 }
  0x93   :  { %4477 = vmatpush3.bf16.msra.mxu0 %v5009_v49  ;;  %v116_v49 = vld [vmem:[#allocation2 + $0x170] sm:$0xff] }
  0x94   :  { %4478 = vmatprep.subr.bf16.mxu0 %v5012_v52  ;;  %v148_v50 = vpack.c.bf16 %v116_v49, %v84_v48  ;;  %v5052_v52 = vld [vmem:[#allocation5 + $0x448] sm:$0xff]  }
  0x95   :  { %4499 = vmatpush3.bf16.msra.mxu1 %v5011_v51  ;;  %v5051_v51 = vld [vmem:[#allocation5 + $0x480] sm:$0xff]   ;;  %v5100_v48 = vld [vmem:[#allocation5 + $0x568] sm:$0xff]  }
  0x96   :  { %4500 = vmatprep.subr.bf16.mxu1 %v5014_v54  ;;  %v5054_v54 = vld [vmem:[#allocation5 + $0x4c8] sm:$0xff]  }
  0x97   :  { %4479 = vmatpush3.bf16.msra.mxu0 %v5013_v53  ;;  %v5053_v53 = vld [vmem:[#allocation5 + $0x408] sm:$0xff]  }
  0x98   :  { %4508 = vmatprep.subr.bf16.mxu0 %v5016_v62  ;;  %v5062_v62 = vld [vmem:[#allocation5 + $0x4d8] sm:$0xff]   ;;  %v5101_v49 = vld [vmem:[#allocation5 + $0x528] sm:$0xff]  }
  0x99   :  { %4501 = vmatpush3.bf16.msra.mxu1 %v5015_v55  ;;  %v5055_v55 = vld [vmem:[#allocation5 + $0x488] sm:$0xff]  }
  0x9a   :  { %2418 = vmatmul.mubr.bf16.vlgmr.msra.gmra.mrb[8].mxu0 %v142_v61  ;;  %4530 = vmatprep.subr.bf16.mxu1 %v5018_v3  ;;  %v5061_v61 = vld [vmem:[#allocation5 + $0x418] sm:$0xff]   ;;  %v5067_v3 = vld [vmem:[#allocation5 + $0x4a0] sm:$0xff]  }
  0x9b   :  { %4509 = vmatpush3.bf16.msra.mxu0 %v5017_v2  ;;  %2499 = vmatprep.mubr.bf16.mxu0 %v147_v39  ;;  %v5066_v2 = vld [vmem:[#allocation5 + $0x4e0] sm:$0xff]   ;;  %v5091_v39 = vld [vmem:[#allocation5 + $0x590] sm:$0xff]  }
  0x9c   :  { %2459 = vmatmul.mubr.bf16.vlgmr.msra.gmra.mrb[8].mxu1 %v144_v6  ;;  %4510 = vmatprep.subr.bf16.mxu0 %v5020_v8  ;;  %v5070_v6 = vld [vmem:[#allocation5 + $0x4e8] sm:$0xff]   ;;  %v5072_v8 = vld [vmem:[#allocation5 + $0x470] sm:$0xff]  }
  0x9d   :  { %4531 = vmatpush3.bf16.msra.mxu1 %v5019_v7  ;;  %2540 = vmatprep.mubr.bf16.mxu1 %v149_v45  ;;  %v5071_v7 = vld [vmem:[#allocation5 + $0x4a8] sm:$0xff]   ;;  %v5097_v45 = vld [vmem:[#allocation5 + $0x520] sm:$0xff]  }
  0x9e   :  { %4532 = vmatprep.subr.bf16.mxu1 %v5022_v10  ;;  %v5074_v10 = vld [vmem:[#allocation5 + $0x4f0] sm:$0xff]  }
  0x9f   :  { %4511 = vmatpush3.bf16.msra.mxu0 %v5021_v9  ;;  %v5073_v9 = vld [vmem:[#allocation5 + $0x430] sm:$0xff]  }
  0xa0   :  { %4512 = vmatprep.subr.bf16.mxu0 %v5024_v12  ;;  %v5076_v12 = vld [vmem:[#allocation5 + $0x478] sm:$0xff]  }
  0xa1   :  { %4533 = vmatpush3.bf16.msra.mxu1 %v5023_v11  ;;  %v5075_v11 = vld [vmem:[#allocation5 + $0x4b0] sm:$0xff]  }
  0xa2   :  { %4534 = vmatprep.subr.bf16.mxu1 %v5026_v14  ;;  %v5078_v14 = vld [vmem:[#allocation5 + $0x4f8] sm:$0xff]  }
  0xa3   :  { %4513 = vmatpush3.bf16.msra.mxu0 %v5025_v13  ;;  %v5077_v13 = vld [vmem:[#allocation5 + $0x438] sm:$0xff]  }
  0xa4   :  { %4514 = vmatprep.subr.bf16.mxu0 %v5028_v16  ;;  %v87_v16 = vld [vmem:[#allocation2 + $0x88] sm:$0xff] }
  0xa5   :  { %4535 = vmatpush3.bf16.msra.mxu1 %v5027_v15  ;;  %v5079_v15 = vld [vmem:[#allocation5 + $0x4b8] sm:$0xff]  }
  0xa6   :  { %4536 = vmatprep.subr.bf16.mxu1 %v5030_v18  ;;  %v86_v18 = vld [vmem:[#allocation2 + $0x80] sm:$0xff] }
  0xa7   :  { %4515 = vmatpush3.bf16.msra.mxu0 %v5029_v17  ;;  %v119_v17 = vld [vmem:[#allocation2 + $0x188] sm:$0xff] }
  0xa8   :  { %4516 = vmatprep.subr.bf16.mxu0 %v5032_v20  ;;  %v151_v20 = vpack.c.bf16 %v119_v17, %v87_v16  ;;  %v5120_v16 = vld [vmem:[#allocation5 + $0x650] sm:$0xff]  }
  0xa9   :  { %4537 = vmatpush3.bf16.msra.mxu1 %v5031_v19  ;;  %v118_v19 = vld [vmem:[#allocation2 + $0x180] sm:$0xff]  ;;  %v5121_v17 = vld [vmem:[#allocation5 + $0x610] sm:$0xff]  }
  0xaa   :  { %4538 = vmatprep.subr.bf16.mxu1 %v5034_v22  ;;  %v5080_v22 = vld [vmem:[#allocation5 + $0x540] sm:$0xff]  }
  0xab   :  { %4517 = vmatpush3.bf16.msra.mxu0 %v5033_v21  ;;  %v150_v21 = vpack.c.bf16 %v118_v19, %v86_v18  ;;  %v5122_v18 = vld [vmem:[#allocation5 + $0x6d0] sm:$0xff]  }
  0xac   :  { %4518 = vmatprep.subr.bf16.mxu0 %v5036_v24  ;;  %v121_v24 = vld [vmem:[#allocation2 + $0x198] sm:$0xff]  ;;  %v5123_v19 = vld [vmem:[#allocation5 + $0x690] sm:$0xff]  }
  0xad   :  { %4539 = vmatpush3.bf16.msra.mxu1 %v5035_v23  ;;  %v89_v23 = vld [vmem:[#allocation2 + $0x98] sm:$0xff] }
  0xae   :  { %4540 = vmatprep.subr.bf16.mxu1 %v5038_v26  ;;  %v5081_v26 = vld [vmem:[#allocation5 + $0x500] sm:$0xff]  }
  0xaf   :  { %4519 = vmatpush3.bf16.msra.mxu0 %v5037_v25  ;;  %v153_v25 = vpack.c.bf16 %v121_v24, %v89_v23  ;;  %v5127_v23 = vld [vmem:[#allocation5 + $0x698] sm:$0xff]   ;;  %v5128_v24 = vld [vmem:[#allocation5 + $0x660] sm:$0xff]  }
  0xb0   :  { %4520 = vmatprep.subr.bf16.mxu0 %v5040_v28  ;;  %v88_v28 = vld [vmem:[#allocation2 + $0x90] sm:$0xff] }
  0xb1   :  { %4541 = vmatpush3.bf16.msra.mxu1 %v5039_v27  ;;  %v5082_v27 = vld [vmem:[#allocation5 + $0x5c0] sm:$0xff]  }
  0xb2   :  { %4542 = vmatprep.subr.bf16.mxu1 %v5042_v30 }
  0xb3   :  { %4521 = vmatpush3.bf16.msra.mxu0 %v5041_v29  ;;  %v120_v29 = vld [vmem:[#allocation2 + $0x190] sm:$0xff] }
  0xb4   :  { %4522 = vmatprep.subr.bf16.mxu0 %v5044_v32  ;;  %v152_v30 = vpack.c.bf16 %v120_v29, %v88_v28  ;;  %v5084_v32 = vld [vmem:[#allocation5 + $0x548] sm:$0xff]  }
  0xb5   :  { %4543 = vmatpush3.bf16.msra.mxu1 %v5043_v31  ;;  %v5083_v31 = vld [vmem:[#allocation5 + $0x580] sm:$0xff]   ;;  %v5132_v28 = vld [vmem:[#allocation5 + $0x668] sm:$0xff]  }
  0xb6   :  { %4544 = vmatprep.subr.bf16.mxu1 %v5046_v34  ;;  %v5086_v34 = vld [vmem:[#allocation5 + $0x5c8] sm:$0xff]  }
  0xb7   :  { %4523 = vmatpush3.bf16.msra.mxu0 %v5045_v33  ;;  %v5085_v33 = vld [vmem:[#allocation5 + $0x508] sm:$0xff]  }
  0xb8   :  { %4552 = vmatprep.subr.bf16.mxu0 %v5048_v42  ;;  %v5094_v42 = vld [vmem:[#allocation5 + $0x5d8] sm:$0xff]   ;;  %v5133_v29 = vld [vmem:[#allocation5 + $0x628] sm:$0xff]  }
  0xb9   :  { %4545 = vmatpush3.bf16.msra.mxu1 %v5047_v35  ;;  %v5087_v35 = vld [vmem:[#allocation5 + $0x588] sm:$0xff]  }
  0xba   :  { %2500 = vmatmul.mubr.bf16.vlgmr.msra.gmra.mrb[12].mxu0 %v146_v41  ;;  %4574 = vmatprep.subr.bf16.mxu1 %v5050_v47  ;;  %v5093_v41 = vld [vmem:[#allocation5 + $0x518] sm:$0xff]   ;;  %v5099_v47 = vld [vmem:[#allocation5 + $0x5a0] sm:$0xff]  }
  0xbb   :  { %4553 = vmatpush3.bf16.msra.mxu0 %v5049_v46  ;;  %2581 = vmatprep.mubr.bf16.mxu0 %v151_v20  ;;  %v5098_v46 = vld [vmem:[#allocation5 + $0x5e0] sm:$0xff]   ;;  %v5124_v20 = vld [vmem:[#allocation5 + $0x658] sm:$0xff]  }
  0xbc   :  { %2541 = vmatmul.mubr.bf16.vlgmr.msra.gmra.mrb[12].mxu1 %v148_v50  ;;  %4554 = vmatprep.subr.bf16.mxu0 %v5052_v52  ;;  %v5102_v50 = vld [vmem:[#allocation5 + $0x5e8] sm:$0xff]   ;;  %v5104_v52 = vld [vmem:[#allocation5 + $0x570] sm:$0xff]  }
  0xbd   :  { %4575 = vmatpush3.bf16.msra.mxu1 %v5051_v51  ;;  %2622 = vmatprep.mubr.bf16.mxu1 %v153_v25  ;;  %v5103_v51 = vld [vmem:[#allocation5 + $0x5a8] sm:$0xff]   ;;  %v5129_v25 = vld [vmem:[#allocation5 + $0x620] sm:$0xff]  }
  0xbe   :  { %4576 = vmatprep.subr.bf16.mxu1 %v5054_v54  ;;  %v5106_v54 = vld [vmem:[#allocation5 + $0x5f0] sm:$0xff]  }
  0xbf   :  { %4555 = vmatpush3.bf16.msra.mxu0 %v5053_v53  ;;  %v5105_v53 = vld [vmem:[#allocation5 + $0x530] sm:$0xff]  }
  0xc0   :  { %4556 = vmatprep.subr.bf16.mxu0 %v5056_v56  ;;  %v5108_v56 = vld [vmem:[#allocation5 + $0x578] sm:$0xff]  }
  0xc1   :  { %4577 = vmatpush3.bf16.msra.mxu1 %v5055_v55  ;;  %v5107_v55 = vld [vmem:[#allocation5 + $0x5b0] sm:$0xff]  }
  0xc2   :  { %4578 = vmatprep.subr.bf16.mxu1 %v5058_v58  ;;  %v5110_v58 = vld [vmem:[#allocation5 + $0x5f8] sm:$0xff]  }
  0xc3   :  { %4557 = vmatpush3.bf16.msra.mxu0 %v5057_v57  ;;  %v5109_v57 = vld [vmem:[#allocation5 + $0x538] sm:$0xff]  }
  0xc4   :  { %4558 = vmatprep.subr.bf16.mxu0 %v5060_v60  ;;  %v91_v60 = vld [vmem:[#allocation2 + $0xa8] sm:$0xff] }
  0xc5   :  { %4579 = vmatpush3.bf16.msra.mxu1 %v5059_v59  ;;  %v5111_v59 = vld [vmem:[#allocation5 + $0x5b8] sm:$0xff]  }
  0xc6   :  { %4580 = vmatprep.subr.bf16.mxu1 %v5062_v62 }
  0xc7   :  { %4559 = vmatpush3.bf16.msra.mxu0 %v5061_v61  ;;  %v123_v61 = vld [vmem:[#allocation2 + $0x1a8] sm:$0xff] }
  0xc8   :  { %4560 = vmatprep.subr.bf16.mxu0 %v5064_v0  ;;  %v155_v62 = vpack.c.bf16 %v123_v61, %v91_v60  ;;  %v122_v0 = vld [vmem:[#allocation2 + $0x1a0] sm:$0xff]  ;;  %v5150_v60 = vld [vmem:[#allocation5 + $0x7c8] sm:$0xff]  }
  0xc9   :  { %4581 = vmatpush3.bf16.msra.mxu1 %v5063_v63  ;;  %v90_v63 = vld [vmem:[#allocation2 + $0xa0] sm:$0xff] }
  0xca   :  { %4582 = vmatprep.subr.bf16.mxu1 %v5066_v2  ;;  %v5112_v2 = vld [vmem:[#allocation5 + $0x640] sm:$0xff]  }
  0xcb   :  { %4561 = vmatpush3.bf16.msra.mxu0 %v5065_v1  ;;  %v154_v1 = vpack.c.bf16 %v122_v0, %v90_v63  ;;  %v5151_v63 = vld [vmem:[#allocation5 + $0x788] sm:$0xff]  }
  0xcc   :  { %4562 = vmatprep.subr.bf16.mxu0 %v5068_v4  ;;  %v125_v4 = vld [vmem:[#allocation2 + $0x1b8] sm:$0xff] }
  0xcd   :  { %4583 = vmatpush3.bf16.msra.mxu1 %v5067_v3  ;;  %v93_v3 = vld [vmem:[#allocation2 + $0xb8] sm:$0xff] }
  0xce   :  { %4584 = vmatprep.subr.bf16.mxu1 %v5070_v6  ;;  %v5113_v6 = vld [vmem:[#allocation5 + $0x600] sm:$0xff]  }
  0xcf   :  { %4563 = vmatpush3.bf16.msra.mxu0 %v5069_v5  ;;  %v157_v5 = vpack.c.bf16 %v125_v4, %v93_v3  ;;  %v5153_v4 = vld [vmem:[#allocation5 + $0x710] sm:$0xff]  }
  0xd0   :  { %4564 = vmatprep.subr.bf16.mxu0 %v5072_v8  ;;  %v92_v8 = vld [vmem:[#allocation2 + $0xb0] sm:$0xff] }
  0xd1   :  { %4585 = vmatpush3.bf16.msra.mxu1 %v5071_v7  ;;  %v5114_v7 = vld [vmem:[#allocation5 + $0x6c0] sm:$0xff]  }
  0xd2   :  { %4586 = vmatprep.subr.bf16.mxu1 %v5074_v10 }
  0xd3   :  { %4565 = vmatpush3.bf16.msra.mxu0 %v5073_v9  ;;  %v124_v9 = vld [vmem:[#allocation2 + $0x1b0] sm:$0xff] }
  0xd4   :  { %4566 = vmatprep.subr.bf16.mxu0 %v5076_v12  ;;  %v156_v10 = vpack.c.bf16 %v124_v9, %v92_v8  ;;  %v5116_v12 = vld [vmem:[#allocation5 + $0x648] sm:$0xff]   ;;  %v5155_v9 = vld [vmem:[#allocation5 + $0x790] sm:$0xff]  }
  0xd5   :  { %4587 = vmatpush3.bf16.msra.mxu1 %v5075_v11  ;;  %v5115_v11 = vld [vmem:[#allocation5 + $0x680] sm:$0xff]  }
  0xd6   :  { %4588 = vmatprep.subr.bf16.mxu1 %v5078_v14  ;;  %v5118_v14 = vld [vmem:[#allocation5 + $0x6c8] sm:$0xff]  }
  0xd7   :  { %4567 = vmatpush3.bf16.msra.mxu0 %v5077_v13  ;;  %v5117_v13 = vld [vmem:[#allocation5 + $0x608] sm:$0xff]  }
  0xd8   :  { %4596 = vmatprep.subr.bf16.mxu0 %v5080_v22  ;;  %v5126_v22 = vld [vmem:[#allocation5 + $0x6d8] sm:$0xff]  }
  0xd9   :  { %4589 = vmatpush3.bf16.msra.mxu1 %v5079_v15  ;;  %v5119_v15 = vld [vmem:[#allocation5 + $0x688] sm:$0xff]  }
  0xda   :  { %2582 = vmatmul.mubr.bf16.vlgmr.msra.gmra.mrb[16].mxu0 %v150_v21  ;;  %4618 = vmatprep.subr.bf16.mxu1 %v5082_v27  ;;  %v5125_v21 = vld [vmem:[#allocation5 + $0x618] sm:$0xff]   ;;  %v5131_v27 = vld [vmem:[#allocation5 + $0x6a0] sm:$0xff]  }
  0xdb   :  { %4597 = vmatpush3.bf16.msra.mxu0 %v5081_v26  ;;  %2663 = vmatprep.mubr.bf16.mxu0 %v155_v62  ;;  %v5130_v26 = vld [vmem:[#allocation5 + $0x6e0] sm:$0xff]  }
  0xdc   :  { %2623 = vmatmul.mubr.bf16.vlgmr.msra.gmra.mrb[16].mxu1 %v152_v30  ;;  %4598 = vmatprep.subr.bf16.mxu0 %v5084_v32  ;;  %v5134_v30 = vld [vmem:[#allocation5 + $0x6e8] sm:$0xff]   ;;  %v5136_v32 = vld [vmem:[#allocation5 + $0x670] sm:$0xff]  }
  0xdd   :  { %4619 = vmatpush3.bf16.msra.mxu1 %v5083_v31  ;;  %2704 = vmatprep.mubr.bf16.mxu1 %v157_v5  ;;  %v5135_v31 = vld [vmem:[#allocation5 + $0x6a8] sm:$0xff]  }
  0xde   :  { %4620 = vmatprep.subr.bf16.mxu1 %v5086_v34  ;;  %v5138_v34 = vld [vmem:[#allocation5 + $0x6f0] sm:$0xff]  }
  0xdf   :  { %4599 = vmatpush3.bf16.msra.mxu0 %v5085_v33  ;;  %v5137_v33 = vld [vmem:[#allocation5 + $0x630] sm:$0xff]  }
  0xe0   :  { %4600 = vmatprep.subr.bf16.mxu0 %v5088_v36  ;;  %v5140_v36 = vld [vmem:[#allocation5 + $0x678] sm:$0xff]  }
  0xe1   :  { %4621 = vmatpush3.bf16.msra.mxu1 %v5087_v35  ;;  %v5139_v35 = vld [vmem:[#allocation5 + $0x6b0] sm:$0xff]  }
  0xe2   :  { %4622 = vmatprep.subr.bf16.mxu1 %v5090_v38  ;;  %v5142_v38 = vld [vmem:[#allocation5 + $0x6f8] sm:$0xff]  }
  0xe3   :  { %4601 = vmatpush3.bf16.msra.mxu0 %v5089_v37  ;;  %v5141_v37 = vld [vmem:[#allocation5 + $0x638] sm:$0xff]  }
  0xe4   :  { %4602 = vmatprep.subr.bf16.mxu0 %v5092_v40  ;;  %v95_v40 = vld [vmem:[#allocation2 + $0xc8] sm:$0xff] }
  0xe5   :  { %4623 = vmatpush3.bf16.msra.mxu1 %v5091_v39  ;;  %v5143_v39 = vld [vmem:[#allocation5 + $0x6b8] sm:$0xff]  }
  0xe6   :  { %4624 = vmatprep.subr.bf16.mxu1 %v5094_v42  ;;  %v94_v42 = vld [vmem:[#allocation2 + $0xc0] sm:$0xff] }
  0xe7   :  { %4603 = vmatpush3.bf16.msra.mxu0 %v5093_v41  ;;  %v127_v41 = vld [vmem:[#allocation2 + $0x1c8] sm:$0xff] }
  0xe8   :  { %4604 = vmatprep.subr.bf16.mxu0 %v5096_v44  ;;  %v126_v44 = vld [vmem:[#allocation2 + $0x1c0] sm:$0xff] }
  0xe9   :  { %4625 = vmatpush3.bf16.msra.mxu1 %v5095_v43  ;;  %v159_v43 = vpack.c.bf16 %v127_v41, %v95_v40  ;;  %v5431_v40 = vmov 0.0|0.0  }
  0xea   :  { %4626 = vmatprep.subr.bf16.mxu1 %v5098_v46  ;;  %v5144_v46 = vld [vmem:[#allocation5 + $0x740] sm:$0xff]  }
  0xeb   :  { %4605 = vmatpush3.bf16.msra.mxu0 %v5097_v45  ;;  %v158_v45 = vpack.c.bf16 %v126_v44, %v94_v42  ;;  %v130_v42 = vld [vmem:[#allocation2 + $0x1e0] sm:$0xff]  ;;  %v133_v44 = vld [vmem:[#allocation2 + $0x1f8] sm:$0xff] }
  0xec   :  { %4606 = vmatprep.subr.bf16.mxu0 %v5100_v48  ;;  %v129_v48 = vld [vmem:[#allocation2 + $0x1d8] sm:$0xff] }
  0xed   :  { %4627 = vmatpush3.bf16.msra.mxu1 %v5099_v47  ;;  %v97_v47 = vld [vmem:[#allocation2 + $0xd8] sm:$0xff] }
  0xee   :  { %4628 = vmatprep.subr.bf16.mxu1 %v5102_v50  ;;  %v5145_v50 = vld [vmem:[#allocation5 + $0x700] sm:$0xff]  }
  0xef   :  { %4607 = vmatpush3.bf16.msra.mxu0 %v5101_v49  ;;  %v161_v49 = vpack.c.bf16 %v129_v48, %v97_v47  ;;  %v100_v47 = vld [vmem:[#allocation2 + $0xf0] sm:$0xff] }
  0xf0   :  { %4608 = vmatprep.subr.bf16.mxu0 %v5104_v52  ;;  %v96_v52 = vld [vmem:[#allocation2 + $0xd0] sm:$0xff] }
  0xf1   :  { %4629 = vmatpush3.bf16.msra.mxu1 %v5103_v51  ;;  %v5146_v51 = vld [vmem:[#allocation5 + $0x7c0] sm:$0xff]   ;;  %v132_v48 = vld [vmem:[#allocation2 + $0x1f0] sm:$0xff] }
  0xf2   :  { %4630 = vmatprep.subr.bf16.mxu1 %v5106_v54 }
  0xf3   :  { %4609 = vmatpush3.bf16.msra.mxu0 %v5105_v53  ;;  %v128_v53 = vld [vmem:[#allocation2 + $0x1d0] sm:$0xff] }
  0xf4   :  { %4610 = vmatprep.subr.bf16.mxu0 %v5108_v56  ;;  %v160_v54 = vpack.c.bf16 %v128_v53, %v96_v52  ;;  %v5148_v56 = vld [vmem:[#allocation5 + $0x748] sm:$0xff]   ;;  %v2879_v52 = vld [vmem:[#allocation7 + $0x10] sm:$0xff]  ;;  %v2880_v53 = vld [vmem:[#allocation7 + $0x18] sm:$0xff] }
  0xf5   :  { %4631 = vmatpush3.bf16.msra.mxu1 %v5107_v55  ;;  %v5147_v55 = vld [vmem:[#allocation5 + $0x780] sm:$0xff]  }
  0xf6   :  { %4632 = vmatprep.subr.bf16.mxu1 %v5110_v58  ;;  %v5149_v58 = vld [vmem:[#allocation5 + $0x708] sm:$0xff]  }
  0xf7   :  { %4611 = vmatpush3.bf16.msra.mxu0 %v5109_v57 }
  0xf8   :  { %4640 = vmatprep.subr.bf16.mxu0 %v5112_v2 }
  0xf9   :  { %4633 = vmatpush3.bf16.msra.mxu1 %v5111_v59 }
  0xfa   :  { %2664 = vmatmul.mubr.bf16.vlgmr.msra.gmra.mrb[20].mxu0 %v154_v1  ;;  %4662 = vmatprep.subr.bf16.mxu1 %v5114_v7  ;;  %v5152_v1 = vld [vmem:[#allocation5 + $0x750] sm:$0xff]  }
  0xfb   :  { %4641 = vmatpush3.bf16.msra.mxu0 %v5113_v6  ;;  %2745 = vmatprep.mubr.bf16.mxu0 %v159_v43  ;;  %v5154_v6 = vld [vmem:[#allocation5 + $0x7d0] sm:$0xff]   ;;  %v101_v43 = vld [vmem:[#allocation2 + $0xf8] sm:$0xff] }
  0xfc   :  { %2705 = vmatmul.mubr.bf16.vlgmr.msra.gmra.mrb[20].mxu1 %v156_v10  ;;  %4642 = vmatprep.subr.bf16.mxu0 %v5116_v12 }
  0xfd   :  { %4663 = vmatpush3.bf16.msra.mxu1 %v5115_v11  ;;  %2786 = vmatprep.mubr.bf16.mxu1 %v161_v49  ;;  %v5156_v11 = vld [vmem:[#allocation5 + $0x758] sm:$0xff]   ;;  %v2877_v49 = vld [vmem:[#allocation7] sm:$0xff] }
  0xfe   :  { %4664 = vmatprep.subr.bf16.mxu1 %v5118_v14  ;;  %v5158_v14 = vld [vmem:[#allocation5 + $0x7d8] sm:$0xff]  }
  0xff   :  { %4643 = vmatpush3.bf16.msra.mxu0 %v5117_v13  ;;  %v5157_v13 = vld [vmem:[#allocation5 + $0x718] sm:$0xff]  }
 0x100   :  { %4644 = vmatprep.subr.bf16.mxu0 %v5120_v16  ;;  %v5160_v16 = vld [vmem:[#allocation5 + $0x760] sm:$0xff]  }
 0x101   :  { %4665 = vmatpush3.bf16.msra.mxu1 %v5119_v15  ;;  %v5159_v15 = vld [vmem:[#allocation5 + $0x798] sm:$0xff]  }
 0x102   :  { %4666 = vmatprep.subr.bf16.mxu1 %v5122_v18  ;;  %v5162_v18 = vld [vmem:[#allocation5 + $0x7e0] sm:$0xff]  }
 0x103   :  { %4645 = vmatpush3.bf16.msra.mxu0 %v5121_v17  ;;  %v5161_v17 = vld [vmem:[#allocation5 + $0x720] sm:$0xff]  }
 0x104   :  { %4646 = vmatprep.subr.bf16.mxu0 %v5124_v20  ;;  %v4094_v20 = vld [vmem:[%s5744_s4] ss:$0 sm:$0xff] }
 0x105   :  { %4667 = vmatpush3.bf16.msra.mxu1 %v5123_v19  ;;  %v5163_v19 = vld [vmem:[#allocation5 + $0x7a0] sm:$0xff]  }
 0x106   :  { %4668 = vmatprep.subr.bf16.mxu1 %v5126_v22  ;;  %v5164_v22 = vld [vmem:[#allocation5 + $0x768] sm:$0xff]  }
 0x107   :  { %4647 = vmatpush3.bf16.msra.mxu0 %v5125_v21 }
 0x108   :  { %4648 = vmatprep.subr.bf16.mxu0 %v5128_v24  ;;  %v5165_v24 = vld [vmem:[#allocation5 + $0x728] sm:$0xff]  }
 0x109   :  { %4669 = vmatpush3.bf16.msra.mxu1 %v5127_v23 }
 0x10a   :  { %4670 = vmatprep.subr.bf16.mxu1 %v5130_v26 }
 0x10b   :  { %4649 = vmatpush3.bf16.msra.mxu0 %v5129_v25  ;;  %v5166_v25 = vld [vmem:[#allocation5 + $0x7e8] sm:$0xff]  }
 0x10c   :  { %4650 = vmatprep.subr.bf16.mxu0 %v5132_v28  ;;  %v5167_v28 = vld [vmem:[#allocation5 + $0x7a8] sm:$0xff]  }
 0x10d   :  { %4671 = vmatpush3.bf16.msra.mxu1 %v5131_v27 }
 0x10e   :  { %4672 = vmatprep.subr.bf16.mxu1 %v5134_v30  ;;  %v5169_v30 = vld [vmem:[#allocation5 + $0x730] sm:$0xff]  }
 0x10f   :  { %4651 = vmatpush3.bf16.msra.mxu0 %v5133_v29  ;;  %v5168_v29 = vld [vmem:[#allocation5 + $0x770] sm:$0xff]  }
 0x110   :  { %4652 = vmatprep.subr.bf16.mxu0 %v5136_v32  ;;  %v5171_v32 = vld [vmem:[#allocation5 + $0x7b0] sm:$0xff]  }
 0x111   :  { %4673 = vmatpush3.bf16.msra.mxu1 %v5135_v31  ;;  %v5170_v31 = vld [vmem:[#allocation5 + $0x7f0] sm:$0xff]  }
 0x112   :  { %4674 = vmatprep.subr.bf16.mxu1 %v5138_v34  ;;  %v5173_v34 = vld [vmem:[#allocation5 + $0x738] sm:$0xff]  }
 0x113   :  { %4653 = vmatpush3.bf16.msra.mxu0 %v5137_v33  ;;  %v5172_v33 = vld [vmem:[#allocation5 + $0x778] sm:$0xff]  }
 0x114   :  { %4654 = vmatprep.subr.bf16.mxu0 %v5140_v36  ;;  %v5175_v36 = vld [vmem:[#allocation5 + $0x7b8] sm:$0xff]  }
 0x115   :  { %4675 = vmatpush3.bf16.msra.mxu1 %v5139_v35  ;;  %v5174_v35 = vld [vmem:[#allocation5 + $0x7f8] sm:$0xff]  }
 0x116   :  { %4676 = vmatprep.subr.bf16.mxu1 %v5142_v38  ;;  %v131_v38 = vld [vmem:[#allocation2 + $0x1e8] sm:$0xff] }
 0x117   :  { %4655 = vmatpush3.bf16.msra.mxu0 %v5141_v37  ;;  %v99_v37 = vld [vmem:[#allocation2 + $0xe8] sm:$0xff] }
 0x118   :  { %4684 = vmatprep.subr.bf16.mxu0 %v5144_v46  ;;  %v163_v41 = vpack.c.bf16 %v131_v38, %v99_v37  ;;  %v165_v46 = vpack.c.bf16 %v133_v44, %v101_v43 }
 0x119   :  { %4677 = vmatpush3.bf16.msra.mxu1 %v5143_v39  ;;  %v98_v39 = vld [vmem:[#allocation2 + $0xe0] sm:$0xff] }
 0x11a   :  { %2746 = vmatmul.mubr.bf16.vlgmr.msra.gmra.mrb[24].mxu0 %v158_v45  ;;  %4706 = vmatprep.subr.bf16.mxu1 %v5146_v51  ;;  %v162_v45 = vpack.c.bf16 %v130_v42, %v98_v39  ;;  %v2878_v51 = vld [vmem:[#allocation7 + $0x8] sm:$0xff] }
 0x11b   :  { %4685 = vmatpush3.bf16.msra.mxu0 %v5145_v50  ;;  %2827 = vmatprep.mubr.bf16.mxu0 %v163_v41  ;;  %v164_v50 = vpack.c.bf16 %v132_v48, %v100_v47 }
 0x11c   :  { %2787 = vmatmul.mubr.bf16.vlgmr.msra.gmra.mrb[24].mxu1 %v160_v54  ;;  %4686 = vmatprep.subr.bf16.mxu0 %v5148_v56  ;;  %v5530_v54 = vpack.c.bf16 %v2878_v51, %v2877_v49  ;;  %v5433_v56 = vmov 0.0  }
 0x11d   :  { %4707 = vmatpush3.bf16.msra.mxu1 %v5147_v55  ;;  %2868 = vmatprep.mubr.bf16.mxu1 %v165_v46  ;;  %v2882_v55 = vld [vmem:[%s5742_s2] sm:$0x3] }
 0x11e   :  { %4708 = vmatprep.subr.bf16.mxu1 %v5150_v60 }
 0x11f   :  { %4687 = vmatpush3.bf16.msra.mxu0 %v5149_v58  ;;  %v5538_v58 = vpack.c.bf16 %v2880_v53, %v2879_v52 }
 0x120   :  { %4688 = vmatprep.subr.bf16.mxu0 %v5152_v1 }
 0x121   :  { %4709 = vmatpush3.bf16.msra.mxu1 %v5151_v63  ;;  %v2881_v63 = vld [vmem:[%s5741_s1] sm:$0x3]  ;;  %s5435_s1 = smov 96  }
 0x122   :  { %4710 = vmatprep.subr.bf16.mxu1 %v5154_v6 }
 0x123   :  { %4689 = vmatpush3.bf16.msra.mxu0 %v5153_v4 }
 0x124   :  { %4690 = vmatprep.subr.bf16.mxu0 %v5156_v11 }
 0x125   :  { %4711 = vmatpush3.bf16.msra.mxu1 %v5155_v9 }
 0x126   :  { %4712 = vmatprep.subr.bf16.mxu1 %v5158_v14 }
 0x127   :  { %4691 = vmatpush3.bf16.msra.mxu0 %v5157_v13 }
 0x128   :  { %4692 = vmatprep.subr.bf16.mxu0 %v5160_v16 }
 0x129   :  { %4713 = vmatpush3.bf16.msra.mxu1 %v5159_v15 }
 0x12a   :  { %4714 = vmatprep.subr.bf16.mxu1 %v5162_v18 }
 0x12b   :  { %4693 = vmatpush3.bf16.msra.mxu0 %v5161_v17 }
 0x12c   :  { %4694 = vmatprep.subr.bf16.mxu0 %v5164_v22 }
 0x12d   :  { %v4392_v57 = vpop.f32.mrb[0].mxu0  ;;  %4715 = vmatpush3.bf16.msra.mxu1 %v5163_v19 }
 0x12e   :  { %v4393_v59 = vpop.f32.mrb[1].mxu0  ;;  %4716 = vmatprep.subr.bf16.mxu1 %v5166_v25 }
 0x12f   :  { %v4394_v61 = vadd.f32 %v4393_v59, %v4392_v57  ;;  %v4395_v62 = vpop.f32.mrb[2].mxu0  ;;  %v4414_v2 = vpop.f32.mrb[0].mxu1  ;;  %4695 = vmatpush3.bf16.msra.mxu0 %v5165_v24  ;;  %v2978_v57 = vrot.slane %v2882_v55, 1 }
 0x130   :  { %v4396_v0 = vpop.f32.mrb[3].mxu0  ;;  %v4415_v5 = vpop.f32.mrb[1].mxu1  ;;  %4696 = vmatprep.subr.bf16.mxu0 %v5168_v29 }
 0x131   :  { %v4397_v3 = vadd.f32 %v4396_v0, %v4395_v62  ;;  %v4416_v7 = vadd.f32 %v4415_v5, %v4414_v2  ;;  %v4417_v8 = vpop.f32.mrb[2].mxu1  ;;  %v2256_v21 = vadd.f32 %v4394_v61, %v4094_v20  ;;  %4717 = vmatpush3.bf16.msra.mxu1 %v5167_v28  ;;  %2981 = vrot.lane.b32.xlu1 %v2978_v57, %s5434_s26 }
 0x132   :  { %v4418_v10 = vpop.f32.mrb[3].mxu1  ;;  %4718 = vmatprep.subr.bf16.mxu1 %v5170_v31 }
 0x133   :  { %v4419_v12 = vadd.f32 %v4418_v10, %v4417_v8  ;;  %v2259_v23 = vadd.f32 %v4397_v3, %v4094_v20  ;;  %v5524_v26 = vadd.f32 %v4416_v7, %v2256_v21  ;;  %4697 = vmatpush3.bf16.msra.mxu0 %v5169_v30 }
 0x134   :  { %4698 = vmatprep.subr.bf16.mxu0 %v5172_v33 }
 0x135   :  { %v5526_v27 = vadd.f32 %v4419_v12, %v2259_v23  ;;  %4719 = vmatpush3.bf16.msra.mxu1 %v5171_v32  ;;  %2979 = vrot.lane.b32.xlu1 %v2882_v55, %s5434_s26 }
 0x136   :  { %4720 = vmatprep.subr.bf16.mxu1 %v5174_v35 }
 0x137   :  { %4699 = vmatpush3.bf16.msra.mxu0 %v5173_v34 }
 0x138   :  { %4856 = vmatprep.subr.bf16.mxu0 %v5431_v40 }
 0x139   :  { %4721 = vmatpush3.bf16.msra.mxu1 %v5175_v36 }
 0x13a   :  { %4862 = vmatprep.subr.bf16.mxu1 %v5431_v40  ;;  %2828 = vmatmul.mubr.bf16.vlgmr.msra.gmra.mrb[28].mxu0 %v162_v45 }
 0x13b   :  { %4776 = vmatprep.mubr.msk.f32.mxu0 %vm5432_vm0, %v5433_v56  ;;  %4858 = vmatpush3.bf16.msra.mxu0 %v5530_v54 }
 0x13c   :  { %2869 = vmatmul.mubr.bf16.vlgmr.msra.gmra.mrb[28].mxu1 %v164_v50  ;;  %4859 = vmatprep.subr.bf16.mxu0 %v5431_v40 }
 0x13d   :  { %4864 = vmatpush3.bf16.msra.mxu1 %v5530_v54  ;;  %4787 = vmatprep.mubr.msk.f32.mxu1 %vm5432_vm0, %v5433_v56 }
 0x13e   :  { %4865 = vmatprep.subr.bf16.mxu1 %v5431_v40 }
 0x13f   :  { %4861 = vmatpush3.bf16.msra.mxu0 %v5538_v58 }
 0x140   :  { %4868 = vmatprep.subr.bf16.mxu0 %v5431_v40 }
 0x141   :  { %4867 = vmatpush3.bf16.msra.mxu1 %v5538_v58 }
 0x142   :  { %4874 = vmatprep.subr.bf16.mxu1 %v5431_v40  ;;  %4777 = vmatmul.mubr.msk.f32.vlgmr.msra.gmra.mrb[32].mxu0 %vm2883_vm1, %v2881_v63 }
 0x143   :  { %4870 = vmatpush3.bf16.msra.mxu0 %v5530_v54  ;;  %4798 = vmatprep.mubr.msk.f32.mxu0 %vm5432_vm0, %v5433_v56 }
 0x144   :  { %4871 = vmatprep.subr.bf16.mxu0 %v5431_v40 }
 0x147   :  { %4873 = vmatpush3.bf16.msra.mxu0 %v5538_v58 }
 0x148   :  { %4880 = vmatprep.subr.bf16.mxu0 %v5431_v40 }
 0x14d   :  { %v4436_v59 = vpop.f32.mrb[4].mxu0 }
 0x14e   :  { %v4437_v60 = vpop.f32.mrb[5].mxu0 }
 0x14f   :  { %v4438_v61 = vadd.f32 %v4437_v60, %v4436_v59  ;;  %v4439_v62 = vpop.f32.mrb[6].mxu0  ;;  %v4458_v2 = vpop.f32.mrb[4].mxu1 }
 0x150   :  { %v4440_v0 = vpop.f32.mrb[7].mxu0  ;;  %v4459_v4 = vpop.f32.mrb[5].mxu1 }
 0x151   :  { %v2338_v1 = vadd.f32 %v4438_v61, %v5524_v26  ;;  %v4441_v3 = vadd.f32 %v4440_v0, %v4439_v62  ;;  %v4460_v6 = vadd.f32 %v4459_v4, %v4458_v2  ;;  %v4461_v7 = vpop.f32.mrb[6].mxu1 }
 0x152   :  { %v4462_v8 = vpop.f32.mrb[7].mxu1 }
 0x153   :  { %v2341_v5 = vadd.f32 %v4441_v3, %v5526_v27  ;;  %v2379_v9 = vadd.f32 %v4460_v6, %v2338_v1  ;;  %v4463_v10 = vadd.f32 %v4462_v8, %v4461_v7 }
 0x155   :  { %v2382_v11 = vadd.f32 %v4463_v10, %v2341_v5 }
 0x16d   :  { %v4480_v12 = vpop.f32.mrb[8].mxu0 }
 0x16e   :  { %v4481_v13 = vpop.f32.mrb[9].mxu0 }
 0x16f   :  { %v4482_v14 = vadd.f32 %v4481_v13, %v4480_v12  ;;  %v4483_v15 = vpop.f32.mrb[10].mxu0  ;;  %v4502_v18 = vpop.f32.mrb[8].mxu1 }
 0x170   :  { %v4484_v16 = vpop.f32.mrb[11].mxu0  ;;  %v4503_v20 = vpop.f32.mrb[9].mxu1 }
 0x171   :  { %v2420_v17 = vadd.f32 %v4482_v14, %v2379_v9  ;;  %v4485_v19 = vadd.f32 %v4484_v16, %v4483_v15  ;;  %v4504_v22 = vadd.f32 %v4503_v20, %v4502_v18  ;;  %v4505_v23 = vpop.f32.mrb[10].mxu1 }
 0x172   :  { %v4506_v24 = vpop.f32.mrb[11].mxu1 }
 0x173   :  { %v2423_v21 = vadd.f32 %v4485_v19, %v2382_v11  ;;  %v2461_v25 = vadd.f32 %v4504_v22, %v2420_v17  ;;  %v4507_v26 = vadd.f32 %v4506_v24, %v4505_v23 }
 0x175   :  { %v2464_v27 = vadd.f32 %v4507_v26, %v2423_v21 }
 0x18d   :  { %v4524_v28 = vpop.f32.mrb[12].mxu0 }
 0x18e   :  { %v4525_v29 = vpop.f32.mrb[13].mxu0 }
 0x18f   :  { %v4526_v30 = vadd.f32 %v4525_v29, %v4524_v28  ;;  %v4527_v31 = vpop.f32.mrb[14].mxu0  ;;  %v4546_v34 = vpop.f32.mrb[12].mxu1 }
 0x190   :  { %v4528_v32 = vpop.f32.mrb[15].mxu0  ;;  %v4547_v36 = vpop.f32.mrb[13].mxu1 }
 0x191   :  { %v2502_v33 = vadd.f32 %v4526_v30, %v2461_v25  ;;  %v4529_v35 = vadd.f32 %v4528_v32, %v4527_v31  ;;  %v4548_v38 = vadd.f32 %v4547_v36, %v4546_v34  ;;  %v4549_v39 = vpop.f32.mrb[14].mxu1 }
 0x192   :  { %v4550_v41 = vpop.f32.mrb[15].mxu1 }
 0x193   :  { %v2505_v37 = vadd.f32 %v4529_v35, %v2464_v27  ;;  %v2543_v42 = vadd.f32 %v4548_v38, %v2502_v33  ;;  %v4551_v43 = vadd.f32 %v4550_v41, %v4549_v39 }
 0x195   :  { %v2546_v44 = vadd.f32 %v4551_v43, %v2505_v37 }
 0x1ad   :  { %v4568_v45 = vpop.f32.mrb[16].mxu0 }
 0x1ae   :  { %v4569_v46 = vpop.f32.mrb[17].mxu0 }
 0x1af   :  { %v4570_v47 = vadd.f32 %v4569_v46, %v4568_v45  ;;  %v4571_v48 = vpop.f32.mrb[18].mxu0  ;;  %v4590_v51 = vpop.f32.mrb[16].mxu1 }
 0x1b0   :  { %v4572_v49 = vpop.f32.mrb[19].mxu0  ;;  %v4591_v53 = vpop.f32.mrb[17].mxu1 }
 0x1b1   :  { %v2584_v50 = vadd.f32 %v4570_v47, %v2543_v42  ;;  %v4573_v52 = vadd.f32 %v4572_v49, %v4571_v48  ;;  %v4592_v57 = vadd.f32 %v4591_v53, %v4590_v51  ;;  %v4593_v59 = vpop.f32.mrb[18].mxu1 }
 0x1b2   :  { %v4594_v60 = vpop.f32.mrb[19].mxu1 }
 0x1b3   :  { %v2587_v55 = vadd.f32 %v4573_v52, %v2546_v44  ;;  %v2625_v61 = vadd.f32 %v4592_v57, %v2584_v50  ;;  %v4595_v62 = vadd.f32 %v4594_v60, %v4593_v59 }
 0x1b5   :  { %v2628_v63 = vadd.f32 %v4595_v62, %v2587_v55 }
 0x1cd   :  { %v4612_v0 = vpop.f32.mrb[20].mxu0 }
 0x1ce   :  { %v4613_v1 = vpop.f32.mrb[21].mxu0 }
 0x1cf   :  { %v4614_v2 = vadd.f32 %v4613_v1, %v4612_v0  ;;  %v4615_v3 = vpop.f32.mrb[22].mxu0  ;;  %v4634_v6 = vpop.f32.mrb[20].mxu1 }
 0x1d0   :  { %v4616_v4 = vpop.f32.mrb[23].mxu0  ;;  %v4635_v8 = vpop.f32.mrb[21].mxu1 }
 0x1d1   :  { %v2666_v5 = vadd.f32 %v4614_v2, %v2625_v61  ;;  %v4617_v7 = vadd.f32 %v4616_v4, %v4615_v3  ;;  %v4636_v10 = vadd.f32 %v4635_v8, %v4634_v6  ;;  %v4637_v11 = vpop.f32.mrb[22].mxu1 }
 0x1d2   :  { %v4638_v12 = vpop.f32.mrb[23].mxu1 }
 0x1d3   :  { %v2669_v9 = vadd.f32 %v4617_v7, %v2628_v63  ;;  %v2707_v13 = vadd.f32 %v4636_v10, %v2666_v5  ;;  %v4639_v14 = vadd.f32 %v4638_v12, %v4637_v11  ;;  %v2982_v7 = vpop.permute.xlu1 %2981 }
 0x1d5   :  { %v2710_v15 = vadd.f32 %v4639_v14, %v2669_v9 }
 0x1d7   :  { %v2980_v9 = vpop.permute.xlu1 %2979 }
 0x1ed   :  { %v4656_v16 = vpop.f32.mrb[24].mxu0 }
 0x1ee   :  { %v4657_v17 = vpop.f32.mrb[25].mxu0 }
 0x1ef   :  { %v4658_v18 = vadd.f32 %v4657_v17, %v4656_v16  ;;  %v4659_v19 = vpop.f32.mrb[26].mxu0  ;;  %v4678_v22 = vpop.f32.mrb[24].mxu1 }
 0x1f0   :  { %v4660_v20 = vpop.f32.mrb[27].mxu0  ;;  %v4679_v24 = vpop.f32.mrb[25].mxu1 }
 0x1f1   :  { %v2748_v21 = vadd.f32 %v4658_v18, %v2707_v13  ;;  %v4661_v23 = vadd.f32 %v4660_v20, %v4659_v19  ;;  %v4680_v26 = vadd.f32 %v4679_v24, %v4678_v22  ;;  %v4681_v27 = vpop.f32.mrb[26].mxu1 }
 0x1f2   :  { %v4682_v28 = vpop.f32.mrb[27].mxu1 }
 0x1f3   :  { %v2751_v25 = vadd.f32 %v4661_v23, %v2710_v15  ;;  %v2789_v29 = vadd.f32 %v4680_v26, %v2748_v21  ;;  %v4683_v30 = vadd.f32 %v4682_v28, %v4681_v27 }
 0x1f5   :  { %v2792_v31 = vadd.f32 %v4683_v30, %v2751_v25 }
 0x20d   :  { %v4700_v32 = vpop.f32.mrb[28].mxu0 }
 0x20e   :  { %v4701_v33 = vpop.f32.mrb[29].mxu0 }
 0x20f   :  { %v4722_v34 = vpop.f32.mrb[28].mxu1  ;;  %v4702_v35 = vadd.f32 %v4701_v33, %v4700_v32  ;;  %v4703_v36 = vpop.f32.mrb[30].mxu0 }
 0x210   :  { %v4723_v37 = vpop.f32.mrb[29].mxu1  ;;  %v4704_v39 = vpop.f32.mrb[31].mxu0 }
 0x211   :  { %v4724_v38 = vadd.f32 %v4723_v37, %v4722_v34  ;;  %v4725_v41 = vpop.f32.mrb[30].mxu1  ;;  %v2830_v42 = vadd.f32 %v4702_v35, %v2789_v29  ;;  %v4705_v43 = vadd.f32 %v4704_v39, %v4703_v36 }
 0x212   :  { %v4726_v44 = vpop.f32.mrb[31].mxu1 }
 0x213   :  { %v4727_v45 = vadd.f32 %v4726_v44, %v4725_v41  ;;  %v5563_v46 = vadd.f32 %v4724_v38, %v2830_v42  ;;  %v2833_v47 = vadd.f32 %v4705_v43, %v2792_v31 }
 0x215   :  { %v5565_v48 = vadd.f32 %v4727_v45, %v2833_v47  ;;  %v2953_v49 = vpop.f32.mrb[32].mxu0 }
 0x216   :  { %v2958_v50 = vrot.slane %v2953_v49, 1  ;;  %v4778_v51 = vpop.f32.mrb[33].mxu0  ;;  %v2961_v53 = vadd.f32 %v2953_v49, %v5563_v46 }
 0x218   :  { %v2962_v52 = vadd.f32 %v2958_v50, %v5565_v48  ;;  %v4352_v60 = vmul.f32 -1.442695, %v2961_v53 }
 0x21a   :  { %5176 = vtanh.f32 %v2962_v52  ;;  %v4353_v59 = vmul.f32 -1.442695, %v2962_v52 }
 0x21b   :  { %5178 = vtanh.f32 %v2961_v53 }
 0x21c   :  { %5180 = vpow2.f32 %v4353_v59 }
 0x21d   :  { %5182 = vpow2.f32 %v4352_v60 }
 0x224   :  { %v5177_v55 = vpop.eup %5176 }
 0x225   :  { %2991 = vrot.lane.b32.xlu0 %v5177_v55, %s5423_s15  ;;  %v5179_v57 = vpop.eup %5178 }
 0x226   :  { %v5181_v61 = vpop.eup %5180 }
 0x227   :  { %v2970_v62 = vadd.f32 1.0, %v5181_v61  ;;  %v5183_v63 = vpop.eup %5182 }
 0x228   :  { %v2969_v0 = vadd.f32 1.0, %v5183_v63 }
 0x229   :  { %2989 = vrot.lane.b32.xlu0 %v5179_v57, %s5423_s15  ;;  %5184 = vrcp.f32 %v2970_v62 }
 0x22a   :  { %5186 = vrcp.f32 %v2969_v0 }
 0x233   :  { %v5185_v1 = vpop.eup %5184 }
 0x234   :  { %v5187_v4 = vpop.eup %5186  ;;  %v2986_v8 = vmul.f32 %v5185_v1, %v2982_v7 }
 0x235   :  { %v2985_v12 = vmul.f32 %v5187_v4, %v2980_v9 }
 0x297   :  { %v2992_v2 = vpop.permute.xlu0 %2991 }
 0x298   :  { %v2996_v3 = vmul.f32 %v5185_v1, %v2992_v2 }
 0x29a   :  { %3001 = vrot.lane.b32.xlu0 %v2996_v3, %s5434_s26 }
 0x29b   :  { %v2990_v5 = vpop.permute.xlu0 %2989 }
 0x29c   :  { %v2995_v6 = vmul.f32 %v5187_v4, %v2990_v5 }
 0x29e   :  { %2999 = vrot.lane.b32.xlu1 %v2995_v6, %s5434_s26 }
 0x30c   :  { %v3002_v10 = vpop.permute.xlu0 %3001 }
 0x30d   :  { %v3006_v11 = vadd.f32 %v3002_v10, %v2986_v8 }
 0x30f   :  { %5188 = vtanh.f32 %v3006_v11  ;;  %v3121_v44 = vrot.slane %v3006_v11, 7 }
 0x310   :  { %v3000_v13 = vpop.permute.xlu1 %2999 }
 0x311   :  { %v3005_v14 = vadd.f32 %v3000_v13, %v2985_v12 }
 0x313   :  { %5190 = vtanh.f32 %v3005_v14  ;;  %v3120_v47 = vrot.slane %v3005_v14, 7 }
 0x319   :  { %v5189_v15 = vpop.eup %5188 }
 0x31a   :  { %3013 = vrot.lane.b32.xlu0 %v5189_v15, %s5423_s15 }
 0x31d   :  { %v5191_v16 = vpop.eup %5190 }
 0x31e   :  { %3011 = vrot.lane.b32.xlu1 %v5191_v16, %s5423_s15 }
 0x38c   :  { %v3014_v17 = vpop.permute.xlu0 %3013 }
 0x38d   :  { %v3018_v18 = vmul.f32 %v5185_v1, %v3014_v17 }
 0x38f   :  { %v3021_v20 = vrot.slane %v3018_v18, 7 }
 0x390   :  { %v3012_v19 = vpop.permute.xlu1 %3011 }
 0x391   :  { %v3017_v21 = vmul.f32 %v5187_v4, %v3012_v19 }
 0x393   :  { %v3023_v22 = vsel %vm3022_vm2, %v3021_v20, %v3017_v21 }
 0x394   :  { %3024 = vrot.lane.b32.xlu0 %v3023_v22, %s5434_s26 }
 0x406   :  { %v5577_v23 = vpop.permute.xlu0 %3024 }
 0x407   :  { %4788 = vmatmul.mubr.msk.f32.vlgmr.msra.gmra.mrb[32].mxu1 %vm2883_vm1, %v5577_v23 }
 0x408   :  { %4876 = vmatpush3.bf16.msra.mxu1 %v5530_v54  ;;  %4809 = vmatprep.mubr.msk.f32.mxu1 %vm5432_vm0, %v5433_v56 }
 0x409   :  { %4877 = vmatprep.subr.bf16.mxu1 %v5431_v40 }
 0x40c   :  { %4879 = vmatpush3.bf16.msra.mxu1 %v5538_v58 }
 0x40d   :  { %4886 = vmatprep.subr.bf16.mxu1 %v5431_v40 }
 0x4da   :  { %v3094_v24 = vpop.f32.mrb[32].mxu1 }
 0x4db   :  { %v3099_v25 = vrot.slane %v3094_v24, 7  ;;  %v3103_v26 = vadd.f32 %v3094_v24, %v5565_v48  ;;  %v4789_v27 = vpop.f32.mrb[33].mxu1 }
 0x4dd   :  { %v3102_v28 = vadd.f32 %v3099_v25, %v5563_v46  ;;  %5192 = vtanh.f32 %v3103_v26  ;;  %v4356_v31 = vmul.f32 -1.442695, %v3103_v26 }
 0x4df   :  { %5194 = vtanh.f32 %v3102_v28  ;;  %v4355_v32 = vmul.f32 -1.442695, %v3102_v28 }
 0x4e0   :  { %5196 = vpow2.f32 %v4356_v31 }
 0x4e1   :  { %5198 = vpow2.f32 %v4355_v32 }
 0x4e7   :  { %v5193_v29 = vpop.eup %5192 }
 0x4e8   :  { %3130 = vrot.lane.b32.xlu0 %v5193_v29, %s5423_s15 }
 0x4e9   :  { %v5195_v30 = vpop.eup %5194 }
 0x4ea   :  { %3128 = vrot.lane.b32.xlu1 %v5195_v30, %s5423_s15  ;;  %v5197_v33 = vpop.eup %5196 }
 0x4eb   :  { %v5199_v34 = vpop.eup %5198  ;;  %v3111_v35 = vadd.f32 1.0, %v5197_v33 }
 0x4ec   :  { %v3110_v36 = vadd.f32 1.0, %v5199_v34 }
 0x4ed   :  { %5200 = vrcp.f32 %v3111_v35 }
 0x4ee   :  { %5202 = vrcp.f32 %v3110_v36 }
 0x4f7   :  { %v5201_v37 = vpop.eup %5200 }
 0x4f8   :  { %v5203_v41 = vpop.eup %5202  ;;  %v3125_v45 = vmul.f32 %v5201_v37, %v3121_v44 }
 0x4f9   :  { %v3124_v51 = vmul.f32 %v5203_v41, %v3120_v47 }
 0x55a   :  { %v3131_v38 = vpop.permute.xlu0 %3130 }
 0x55b   :  { %v3135_v39 = vmul.f32 %v5201_v37, %v3131_v38 }
 0x55c   :  { %v3129_v42 = vpop.permute.xlu1 %3128 }
 0x55d   :  { %3140 = vrot.lane.b32.xlu0 %v3135_v39, %s5434_s26  ;;  %v3134_v43 = vmul.f32 %v5203_v41, %v3129_v42 }
 0x55f   :  { %3138 = vrot.lane.b32.xlu1 %v3134_v43, %s5434_s26 }
 0x5cf   :  { %v3141_v49 = vpop.permute.xlu0 %3140 }
 0x5d0   :  { %v3145_v50 = vadd.f32 %v3141_v49, %v3125_v45 }
 0x5d1   :  { %v3139_v52 = vpop.permute.xlu1 %3138 }
 0x5d2   :  { %5204 = vtanh.f32 %v3145_v50  ;;  %v3144_v53 = vadd.f32 %v3139_v52, %v3124_v51  ;;  %v3260_v24 = vrot.slane %v3145_v50, 7 }
 0x5d4   :  { %5206 = vtanh.f32 %v3144_v53  ;;  %v3259_v22 = vrot.slane %v3144_v53, 7 }
 0x5dc   :  { %v5205_v55 = vpop.eup %5204 }
 0x5dd   :  { %3152 = vrot.lane.b32.xlu0 %v5205_v55, %s5423_s15 }
 0x5de   :  { %v5207_v57 = vpop.eup %5206 }
 0x5df   :  { %3150 = vrot.lane.b32.xlu1 %v5207_v57, %s5423_s15 }
 0x64f   :  { %v3153_v59 = vpop.permute.xlu0 %3152 }
 0x650   :  { %v3157_v62 = vmul.f32 %v5201_v37, %v3153_v59 }
 0x651   :  { %v3151_v60 = vpop.permute.xlu1 %3150 }
 0x652   :  { %v3156_v61 = vmul.f32 %v5203_v41, %v3151_v60 }
 0x654   :  { %v3160_v63 = vrot.slane %v3156_v61, 1 }
 0x656   :  { %v5596_v0 = vsel %vm3022_vm2, %v3157_v62, %v3160_v63 }
 0x657   :  { %3162 = vrot.lane.b32.xlu1 %v5596_v0, %s5434_s26 }
 0x6c9   :  { %v3163_v1 = vpop.permute.xlu1 %3162 }
 0x6ca   :  { %4799 = vmatmul.mubr.msk.f32.vlgmr.msra.gmra.mrb[34].mxu0 %vm2883_vm1, %v3163_v1 }
 0x6cb   :  { %4882 = vmatpush3.bf16.msra.mxu0 %v5530_v54  ;;  %4820 = vmatprep.mubr.msk.f32.mxu0 %vm5432_vm0, %v5433_v56 }
 0x6cc   :  { %4883 = vmatprep.subr.bf16.mxu0 %v5431_v40 }
 0x6cf   :  { %4885 = vmatpush3.bf16.msra.mxu0 %v5538_v58 }
 0x6d0   :  { %4892 = vmatprep.subr.bf16.mxu0 %v5431_v40 }
 0x79d   :  { %v3232_v2 = vpop.f32.mrb[34].mxu0 }
 0x79e   :  { %v3237_v3 = vrot.slane %v3232_v2, 6  ;;  %v3238_v4 = vrot.slane %v3232_v2, 7  ;;  %v4800_v5 = vpop.f32.mrb[35].mxu0 }
 0x7a0   :  { %v3241_v6 = vadd.f32 %v3237_v3, %v5563_v46  ;;  %v3242_v7 = vadd.f32 %v3238_v4, %v5565_v48 }
 0x7a2   :  { %5208 = vtanh.f32 %v3241_v6  ;;  %v4358_v10 = vmul.f32 -1.442695, %v3241_v6  ;;  %v4359_v11 = vmul.f32 -1.442695, %v3242_v7 }
 0x7a3   :  { %5210 = vtanh.f32 %v3242_v7 }
 0x7a4   :  { %5212 = vpow2.f32 %v4358_v10 }
 0x7a5   :  { %5214 = vpow2.f32 %v4359_v11 }
 0x7ac   :  { %v5209_v8 = vpop.eup %5208 }
 0x7ad   :  { %v5211_v9 = vpop.eup %5210  ;;  %3267 = vrot.lane.b32.xlu0 %v5209_v8, %s5423_s15 }
 0x7ae   :  { %3269 = vrot.lane.b32.xlu1 %v5211_v9, %s5423_s15  ;;  %v5213_v12 = vpop.eup %5212 }
 0x7af   :  { %v5215_v13 = vpop.eup %5214  ;;  %v3249_v14 = vadd.f32 1.0, %v5213_v12 }
 0x7b0   :  { %v3250_v15 = vadd.f32 1.0, %v5215_v13 }
 0x7b1   :  { %5216 = vrcp.f32 %v3249_v14 }
 0x7b2   :  { %5218 = vrcp.f32 %v3250_v15 }
 0x7bb   :  { %v5217_v16 = vpop.eup %5216 }
 0x7bc   :  { %v5219_v18 = vpop.eup %5218  ;;  %v3263_v25 = vmul.f32 %v5217_v16, %v3259_v22 }
 0x7bd   :  { %v3264_v26 = vmul.f32 %v5219_v18, %v3260_v24 }
 0x81f   :  { %v3268_v17 = vpop.permute.xlu0 %3267 }
 0x820   :  { %v3270_v19 = vpop.permute.xlu1 %3269  ;;  %v3273_v20 = vmul.f32 %v5217_v16, %v3268_v17 }
 0x821   :  { %v3274_v21 = vmul.f32 %v5219_v18, %v3270_v19 }
 0x822   :  { %3277 = vrot.lane.b32.xlu0 %v3273_v20, %s5434_s26 }
 0x823   :  { %3279 = vrot.lane.b32.xlu1 %v3274_v21, %s5434_s26 }
 0x894   :  { %v3278_v27 = vpop.permute.xlu0 %3277 }
 0x895   :  { %v3280_v28 = vpop.permute.xlu1 %3279  ;;  %v3283_v29 = vadd.f32 %v3278_v27, %v3263_v25 }
 0x896   :  { %v3284_v30 = vadd.f32 %v3280_v28, %v3264_v26 }
 0x897   :  { %5220 = vtanh.f32 %v3283_v29  ;;  %v3399_v4 = vrot.slane %v3283_v29, 7 }
 0x898   :  { %5222 = vtanh.f32 %v3284_v30  ;;  %v3400_v5 = vrot.slane %v3284_v30, 7 }
 0x8a1   :  { %v5221_v31 = vpop.eup %5220 }
 0x8a2   :  { %v5223_v32 = vpop.eup %5222  ;;  %3289 = vrot.lane.b32.xlu0 %v5221_v31, %s5423_s15 }
 0x8a3   :  { %3291 = vrot.lane.b32.xlu1 %v5223_v32, %s5423_s15 }
 0x914   :  { %v3290_v33 = vpop.permute.xlu0 %3289 }
 0x915   :  { %v3292_v34 = vpop.permute.xlu1 %3291  ;;  %v3295_v35 = vmul.f32 %v5217_v16, %v3290_v33 }
 0x916   :  { %v3296_v36 = vmul.f32 %v5219_v18, %v3292_v34 }
 0x917   :  { %v3299_v37 = vrot.slane %v3295_v35, 2 }
 0x918   :  { %v3300_v38 = vrot.slane %v3296_v36, 1 }
 0x91a   :  { %v5616_v39 = vsel %vm3022_vm2, %v3300_v38, %v3299_v37 }
 0x91b   :  { %3302 = vrot.lane.b32.xlu0 %v5616_v39, %s5434_s26 }
 0x98d   :  { %v3303_v41 = vpop.permute.xlu0 %3302 }
 0x98e   :  { %4810 = vmatmul.mubr.msk.f32.vlgmr.msra.gmra.mrb[34].mxu1 %vm2883_vm1, %v3303_v41 }
 0x98f   :  { %4888 = vmatpush3.bf16.msra.mxu1 %v5530_v54  ;;  %4831 = vmatprep.mubr.msk.f32.mxu1 %vm5432_vm0, %v5433_v56 }
 0x990   :  { %4889 = vmatprep.subr.bf16.mxu1 %v5431_v40 }
 0x993   :  { %4891 = vmatpush3.bf16.msra.mxu1 %v5538_v58 }
 0x994   :  { %4898 = vmatprep.subr.bf16.mxu1 %v5431_v40 }
 0xa61   :  { %v3372_v42 = vpop.f32.mrb[34].mxu1 }
 0xa62   :  { %v3377_v43 = vrot.slane %v3372_v42, 5  ;;  %v3378_v44 = vrot.slane %v3372_v42, 6  ;;  %v4811_v45 = vpop.f32.mrb[35].mxu1 }
 0xa64   :  { %v3381_v47 = vadd.f32 %v3377_v43, %v5563_v46  ;;  %v3382_v49 = vadd.f32 %v3378_v44, %v5565_v48 }
 0xa66   :  { %5224 = vtanh.f32 %v3381_v47  ;;  %v4361_v52 = vmul.f32 -1.442695, %v3381_v47  ;;  %v4362_v53 = vmul.f32 -1.442695, %v3382_v49 }
 0xa67   :  { %5226 = vtanh.f32 %v3382_v49 }
 0xa68   :  { %5228 = vpow2.f32 %v4361_v52 }
 0xa69   :  { %5230 = vpow2.f32 %v4362_v53 }
 0xa70   :  { %v5225_v50 = vpop.eup %5224 }
 0xa71   :  { %v5227_v51 = vpop.eup %5226  ;;  %3407 = vrot.lane.b32.xlu1 %v5225_v50, %s5423_s15 }
 0xa72   :  { %3409 = vrot.lane.b32.xlu0 %v5227_v51, %s5423_s15  ;;  %v5229_v55 = vpop.eup %5228 }
 0xa73   :  { %v5231_v57 = vpop.eup %5230  ;;  %v3389_v59 = vadd.f32 1.0, %v5229_v55 }
 0xa74   :  { %v3390_v60 = vadd.f32 1.0, %v5231_v57 }
 0xa75   :  { %5232 = vrcp.f32 %v3389_v59 }
 0xa76   :  { %5234 = vrcp.f32 %v3390_v60 }
 0xa7f   :  { %v5233_v61 = vpop.eup %5232 }
 0xa80   :  { %v5235_v63 = vpop.eup %5234  ;;  %v3403_v6 = vmul.f32 %v5233_v61, %v3399_v4 }
 0xa81   :  { %v3404_v7 = vmul.f32 %v5235_v63, %v3400_v5 }
 0xae3   :  { %v3408_v62 = vpop.permute.xlu1 %3407 }
 0xae4   :  { %v3410_v1 = vpop.permute.xlu0 %3409  ;;  %v3413_v2 = vmul.f32 %v5233_v61, %v3408_v62 }
 0xae5   :  { %v3414_v3 = vmul.f32 %v5235_v63, %v3410_v1 }
 0xae6   :  { %3417 = vrot.lane.b32.xlu1 %v3413_v2, %s5434_s26 }
 0xae7   :  { %3419 = vrot.lane.b32.xlu0 %v3414_v3, %s5434_s26 }
 0xb58   :  { %v3418_v8 = vpop.permute.xlu1 %3417 }
 0xb59   :  { %v3420_v9 = vpop.permute.xlu0 %3419  ;;  %v3423_v10 = vadd.f32 %v3418_v8, %v3403_v6 }
 0xb5a   :  { %v3424_v11 = vadd.f32 %v3420_v9, %v3404_v7 }
 0xb5b   :  { %5236 = vtanh.f32 %v3423_v10  ;;  %v3539_v45 = vrot.slane %v3423_v10, 7 }
 0xb5c   :  { %5238 = vtanh.f32 %v3424_v11  ;;  %v3540_v47 = vrot.slane %v3424_v11, 7 }
 0xb65   :  { %v5237_v12 = vpop.eup %5236 }
 0xb66   :  { %v5239_v13 = vpop.eup %5238  ;;  %3429 = vrot.lane.b32.xlu1 %v5237_v12, %s5423_s15 }
 0xb67   :  { %3431 = vrot.lane.b32.xlu0 %v5239_v13, %s5423_s15 }
 0xbd8   :  { %v3430_v14 = vpop.permute.xlu1 %3429 }
 0xbd9   :  { %v3432_v15 = vpop.permute.xlu0 %3431  ;;  %v3435_v16 = vmul.f32 %v5233_v61, %v3430_v14 }
 0xbda   :  { %v3436_v17 = vmul.f32 %v5235_v63, %v3432_v15 }
 0xbdb   :  { %v3439_v18 = vrot.slane %v3435_v16, 3 }
 0xbdc   :  { %v3440_v19 = vrot.slane %v3436_v17, 2 }
 0xbde   :  { %v5636_v20 = vsel %vm3022_vm2, %v3440_v19, %v3439_v18 }
 0xbdf   :  { %3442 = vrot.lane.b32.xlu1 %v5636_v20, %s5434_s26 }
 0xc51   :  { %v3443_v21 = vpop.permute.xlu1 %3442 }
 0xc52   :  { %4821 = vmatmul.mubr.msk.f32.vlgmr.msra.gmra.mrb[36].mxu0 %vm2883_vm1, %v3443_v21 }
 0xc53   :  { %4894 = vmatpush3.bf16.msra.mxu0 %v5530_v54  ;;  %4842 = vmatprep.mubr.msk.f32.mxu0 %vm5432_vm0, %v5433_v56 }
 0xc54   :  { %4895 = vmatprep.subr.bf16.mxu0 %v5431_v40 }
 0xc57   :  { %4897 = vmatpush3.bf16.msra.mxu0 %v5538_v58 }
 0xd25   :  { %v3512_v22 = vpop.f32.mrb[36].mxu0 }
 0xd26   :  { %v3517_v24 = vrot.slane %v3512_v22, 4  ;;  %v3518_v25 = vrot.slane %v3512_v22, 5  ;;  %v4822_v26 = vpop.f32.mrb[37].mxu0 }
 0xd28   :  { %v3521_v27 = vadd.f32 %v3517_v24, %v5563_v46  ;;  %v3522_v28 = vadd.f32 %v3518_v25, %v5565_v48 }
 0xd2a   :  { %5240 = vtanh.f32 %v3521_v27  ;;  %v4364_v31 = vmul.f32 -1.442695, %v3521_v27  ;;  %v4365_v32 = vmul.f32 -1.442695, %v3522_v28 }
 0xd2b   :  { %5242 = vtanh.f32 %v3522_v28 }
 0xd2c   :  { %5244 = vpow2.f32 %v4364_v31 }
 0xd2d   :  { %5246 = vpow2.f32 %v4365_v32 }
 0xd34   :  { %v5241_v29 = vpop.eup %5240 }
 0xd35   :  { %v5243_v30 = vpop.eup %5242  ;;  %3547 = vrot.lane.b32.xlu0 %v5241_v29, %s5423_s15 }
 0xd36   :  { %3549 = vrot.lane.b32.xlu1 %v5243_v30, %s5423_s15  ;;  %v5245_v33 = vpop.eup %5244 }
 0xd37   :  { %v5247_v34 = vpop.eup %5246  ;;  %v3529_v35 = vadd.f32 1.0, %v5245_v33 }
 0xd38   :  { %v3530_v36 = vadd.f32 1.0, %v5247_v34 }
 0xd39   :  { %5248 = vrcp.f32 %v3529_v35 }
 0xd3a   :  { %5250 = vrcp.f32 %v3530_v36 }
 0xd43   :  { %v5249_v37 = vpop.eup %5248 }
 0xd44   :  { %v5251_v41 = vpop.eup %5250  ;;  %v3543_v49 = vmul.f32 %v5249_v37, %v3539_v45 }
 0xd45   :  { %v3544_v50 = vmul.f32 %v5251_v41, %v3540_v47 }
 0xda7   :  { %v3548_v38 = vpop.permute.xlu0 %3547 }
 0xda8   :  { %v3550_v42 = vpop.permute.xlu1 %3549  ;;  %v3553_v43 = vmul.f32 %v5249_v37, %v3548_v38 }
 0xda9   :  { %v3554_v44 = vmul.f32 %v5251_v41, %v3550_v42 }
 0xdaa   :  { %3557 = vrot.lane.b32.xlu0 %v3553_v43, %s5434_s26 }
 0xdab   :  { %3559 = vrot.lane.b32.xlu1 %v3554_v44, %s5434_s26 }
 0xe1c   :  { %v3558_v51 = vpop.permute.xlu0 %3557 }
 0xe1d   :  { %v3560_v52 = vpop.permute.xlu1 %3559  ;;  %v3563_v53 = vadd.f32 %v3558_v51, %v3543_v49 }
 0xe1e   :  { %v3564_v55 = vadd.f32 %v3560_v52, %v3544_v50 }
 0xe1f   :  { %5252 = vtanh.f32 %v3563_v53  ;;  %v3679_v22 = vrot.slane %v3563_v53, 7 }
 0xe20   :  { %5254 = vtanh.f32 %v3564_v55  ;;  %v3680_v24 = vrot.slane %v3564_v55, 7 }
 0xe29   :  { %v5253_v57 = vpop.eup %5252 }
 0xe2a   :  { %v5255_v59 = vpop.eup %5254  ;;  %3569 = vrot.lane.b32.xlu0 %v5253_v57, %s5423_s15 }
 0xe2b   :  { %3571 = vrot.lane.b32.xlu1 %v5255_v59, %s5423_s15 }
 0xe9c   :  { %v3570_v60 = vpop.permute.xlu0 %3569 }
 0xe9d   :  { %v3572_v61 = vpop.permute.xlu1 %3571  ;;  %v3575_v62 = vmul.f32 %v5249_v37, %v3570_v60 }
 0xe9e   :  { %v3576_v63 = vmul.f32 %v5251_v41, %v3572_v61 }
 0xe9f   :  { %v3579_v1 = vrot.slane %v3575_v62, 4 }
 0xea0   :  { %v3580_v2 = vrot.slane %v3576_v63, 3 }
 0xea2   :  { %v3581_v3 = vsel %vm3022_vm2, %v3580_v2, %v3579_v1 }
 0xea3   :  { %3582 = vrot.lane.b32.xlu0 %v3581_v3, %s5434_s26 }
 0xf15   :  { %v5656_v4 = vpop.permute.xlu0 %3582 }
 0xf16   :  { %4832 = vmatmul.mubr.msk.f32.vlgmr.msra.gmra.mrb[36].mxu1 %vm2883_vm1, %v5656_v4 }
 0xf17   :  { %4900 = vmatpush3.bf16.msra.mxu1 %v5530_v54  ;;  %4853 = vmatprep.mubr.msk.f32.mxu1 %vm5432_vm0, %v5433_v56 }
 0xf18   :  { %4901 = vmatprep.subr.bf16.mxu1 %v5431_v40 }
 0xf1b   :  { %4903 = vmatpush3.bf16.msra.mxu1 %v5538_v58 }
 0xfe9   :  { %v3652_v5 = vpop.f32.mrb[36].mxu1 }
 0xfea   :  { %v3657_v6 = vrot.slane %v3652_v5, 3  ;;  %v3658_v7 = vrot.slane %v3652_v5, 4  ;;  %v4833_v8 = vpop.f32.mrb[37].mxu1 }
 0xfec   :  { %v3661_v9 = vadd.f32 %v3657_v6, %v5563_v46  ;;  %v3662_v10 = vadd.f32 %v3658_v7, %v5565_v48 }
 0xfee   :  { %5256 = vtanh.f32 %v3661_v9  ;;  %v4367_v54 = vmul.f32 -1.442695, %v3661_v9  ;;  %v4368_v40 = vmul.f32 -1.442695, %v3662_v10 }
 0xfef   :  { %5258 = vtanh.f32 %v3662_v10 }
 0xff0   :  { %5260 = vpow2.f32 %v4367_v54 }
 0xff1   :  { %5262 = vpow2.f32 %v4368_v40 }
 0xff8   :  { %v5257_v11 = vpop.eup %5256 }
 0xff9   :  { %v5259_v12 = vpop.eup %5258  ;;  %3687 = vrot.lane.b32.xlu1 %v5257_v11, %s5423_s15 }
 0xffa   :  { %3689 = vrot.lane.b32.xlu0 %v5259_v12, %s5423_s15  ;;  %v5261_v56 = vpop.eup %5260 }
 0xffb   :  { %v5263_v58 = vpop.eup %5262  ;;  %v3669_v13 = vadd.f32 1.0, %v5261_v56 }
 0xffc   :  { %v3670_v14 = vadd.f32 1.0, %v5263_v58 }
 0xffd   :  { %5264 = vrcp.f32 %v3669_v13 }
 0xffe   :  { %5266 = vrcp.f32 %v3670_v14 }
0x1007   :  { %v5265_v15 = vpop.eup %5264 }
0x1008   :  { %v5267_v17 = vpop.eup %5266  ;;  %v3683_v25 = vmul.f32 %v5265_v15, %v3679_v22 }
0x1009   :  { %v3684_v26 = vmul.f32 %v5267_v17, %v3680_v24 }
0x106b   :  { %v3688_v16 = vpop.permute.xlu1 %3687 }
0x106c   :  { %v3690_v18 = vpop.permute.xlu0 %3689  ;;  %v3693_v19 = vmul.f32 %v5265_v15, %v3688_v16 }
0x106d   :  { %v3694_v21 = vmul.f32 %v5267_v17, %v3690_v18 }
0x106e   :  { %3697 = vrot.lane.b32.xlu1 %v3693_v19, %s5434_s26 }
0x106f   :  { %3699 = vrot.lane.b32.xlu0 %v3694_v21, %s5434_s26 }
0x10e0   :  { %v3698_v27 = vpop.permute.xlu1 %3697 }
0x10e1   :  { %v3700_v28 = vpop.permute.xlu0 %3699  ;;  %v3703_v29 = vadd.f32 %v3698_v27, %v3683_v25 }
0x10e2   :  { %v3704_v30 = vadd.f32 %v3700_v28, %v3684_v26 }
0x10e3   :  { %5268 = vtanh.f32 %v3703_v29  ;;  %v3819_v6 = vrot.slane %v3703_v29, 7 }
0x10e4   :  { %5270 = vtanh.f32 %v3704_v30  ;;  %v3820_v7 = vrot.slane %v3704_v30, 7 }
0x10ed   :  { %v5269_v31 = vpop.eup %5268 }
0x10ee   :  { %v5271_v32 = vpop.eup %5270  ;;  %3709 = vrot.lane.b32.xlu1 %v5269_v31, %s5423_s15 }
0x10ef   :  { %3711 = vrot.lane.b32.xlu0 %v5271_v32, %s5423_s15 }
0x1160   :  { %v3710_v33 = vpop.permute.xlu1 %3709 }
0x1161   :  { %v3712_v34 = vpop.permute.xlu0 %3711  ;;  %v3715_v35 = vmul.f32 %v5265_v15, %v3710_v33 }
0x1162   :  { %v3716_v36 = vmul.f32 %v5267_v17, %v3712_v34 }
0x1163   :  { %v3719_v37 = vrot.slane %v3715_v35, 5 }
0x1164   :  { %v3720_v38 = vrot.slane %v3716_v36, 4 }
0x1166   :  { %v5674_v41 = vsel %vm3022_vm2, %v3720_v38, %v3719_v37 }
0x1167   :  { %3722 = vrot.lane.b32.xlu1 %v5674_v41, %s5434_s26 }
0x11d9   :  { %v3723_v42 = vpop.permute.xlu1 %3722 }
0x11da   :  { %4843 = vmatmul.mubr.msk.f32.vlgmr.msra.gmra.mrb[38].mxu0 %vm2883_vm1, %v3723_v42 }
0x12ad   :  { %v3792_v43 = vpop.f32.mrb[38].mxu0 }
0x12ae   :  { %v3797_v44 = vrot.slane %v3792_v43, 2  ;;  %v3798_v45 = vrot.slane %v3792_v43, 3  ;;  %v4844_v47 = vpop.f32.mrb[39].mxu0 }
0x12b0   :  { %v3801_v49 = vadd.f32 %v3797_v44, %v5563_v46  ;;  %v3802_v50 = vadd.f32 %v3798_v45, %v5565_v48 }
0x12b2   :  { %5272 = vtanh.f32 %v3801_v49  ;;  %v4370_v53 = vmul.f32 -1.442695, %v3801_v49  ;;  %v4371_v55 = vmul.f32 -1.442695, %v3802_v50 }
0x12b3   :  { %5274 = vtanh.f32 %v3802_v50 }
0x12b4   :  { %5276 = vpow2.f32 %v4370_v53 }
0x12b5   :  { %5278 = vpow2.f32 %v4371_v55 }
0x12bc   :  { %v5273_v51 = vpop.eup %5272 }
0x12bd   :  { %v5275_v52 = vpop.eup %5274  ;;  %3827 = vrot.lane.b32.xlu0 %v5273_v51, %s5423_s15 }
0x12be   :  { %3829 = vrot.lane.b32.xlu1 %v5275_v52, %s5423_s15  ;;  %v5277_v57 = vpop.eup %5276 }
0x12bf   :  { %v5279_v59 = vpop.eup %5278  ;;  %v3809_v60 = vadd.f32 1.0, %v5277_v57 }
0x12c0   :  { %v3810_v61 = vadd.f32 1.0, %v5279_v59 }
0x12c1   :  { %5280 = vrcp.f32 %v3809_v60 }
0x12c2   :  { %5282 = vrcp.f32 %v3810_v61 }
0x12cb   :  { %v5281_v62 = vpop.eup %5280 }
0x12cc   :  { %v5283_v1 = vpop.eup %5282  ;;  %v3823_v8 = vmul.f32 %v5281_v62, %v3819_v6 }
0x12cd   :  { %v3824_v9 = vmul.f32 %v5283_v1, %v3820_v7 }
0x132f   :  { %v3828_v63 = vpop.permute.xlu0 %3827 }
0x1330   :  { %v3830_v2 = vpop.permute.xlu1 %3829  ;;  %v3833_v3 = vmul.f32 %v5281_v62, %v3828_v63 }
0x1331   :  { %v3834_v5 = vmul.f32 %v5283_v1, %v3830_v2 }
0x1332   :  { %3837 = vrot.lane.b32.xlu0 %v3833_v3, %s5434_s26 }
0x1333   :  { %3839 = vrot.lane.b32.xlu1 %v3834_v5, %s5434_s26 }
0x13a4   :  { %v3838_v10 = vpop.permute.xlu0 %3837 }
0x13a5   :  { %v3840_v11 = vpop.permute.xlu1 %3839  ;;  %v3843_v12 = vadd.f32 %v3838_v10, %v3823_v8 }
0x13a6   :  { %v3844_v54 = vadd.f32 %v3840_v11, %v3824_v9 }
0x13a7   :  { %5284 = vtanh.f32 %v3843_v12  ;;  %v3959_v43 = vrot.slane %v3843_v12, 7 }
0x13a8   :  { %5286 = vtanh.f32 %v3844_v54  ;;  %v3960_v44 = vrot.slane %v3844_v54, 7 }
0x13b1   :  { %v5285_v40 = vpop.eup %5284 }
0x13b2   :  { %v5287_v56 = vpop.eup %5286  ;;  %3849 = vrot.lane.b32.xlu0 %v5285_v40, %s5423_s15 }
0x13b3   :  { %3851 = vrot.lane.b32.xlu1 %v5287_v56, %s5423_s15 }
0x1424   :  { %v3850_v58 = vpop.permute.xlu0 %3849 }
0x1425   :  { %v3852_v13 = vpop.permute.xlu1 %3851  ;;  %v3855_v14 = vmul.f32 %v5281_v62, %v3850_v58 }
0x1426   :  { %v3856_v15 = vmul.f32 %v5283_v1, %v3852_v13 }
0x1427   :  { %v3859_v16 = vrot.slane %v3855_v14, 6 }
0x1428   :  { %v3860_v17 = vrot.slane %v3856_v15, 5 }
0x142a   :  { %v3861_v18 = vsel %vm3022_vm2, %v3860_v17, %v3859_v16 }
0x142b   :  { %3862 = vrot.lane.b32.xlu0 %v3861_v18, %s5434_s26 }
0x149d   :  { %v3863_v19 = vpop.permute.xlu0 %3862 }
0x149e   :  { %4854 = vmatmul.mubr.msk.f32.vlgmr.msra.gmra.mrb[38].mxu1 %vm2883_vm1, %v3863_v19 }
0x1571   :  { %v3932_v21 = vpop.f32.mrb[38].mxu1 }
0x1572   :  { %v3937_v22 = vrot.slane %v3932_v21, 1  ;;  %v3938_v24 = vrot.slane %v3932_v21, 2  ;;  %v4855_v25 = vpop.f32.mrb[39].mxu1 }
0x1574   :  { %v3941_v26 = vadd.f32 %v3937_v22, %v5563_v46  ;;  %v3942_v27 = vadd.f32 %v3938_v24, %v5565_v48 }
0x1576   :  { %5288 = vtanh.f32 %v3941_v26  ;;  %v4373_v30 = vmul.f32 -1.442695, %v3941_v26  ;;  %v4374_v31 = vmul.f32 -1.442695, %v3942_v27 }
0x1577   :  { %5290 = vtanh.f32 %v3942_v27 }
0x1578   :  { %5292 = vpow2.f32 %v4373_v30 }
0x1579   :  { %5294 = vpow2.f32 %v4374_v31 }
0x1580   :  { %v5289_v28 = vpop.eup %5288 }
0x1581   :  { %v5291_v29 = vpop.eup %5290  ;;  %3967 = vrot.lane.b32.xlu0 %v5289_v28, %s5423_s15 }
0x1582   :  { %3969 = vrot.lane.b32.xlu1 %v5291_v29, %s5423_s15  ;;  %v5293_v32 = vpop.eup %5292 }
0x1583   :  { %v5295_v33 = vpop.eup %5294  ;;  %v3949_v34 = vadd.f32 1.0, %v5293_v32 }
0x1584   :  { %v3950_v35 = vadd.f32 1.0, %v5295_v33 }
0x1585   :  { %5296 = vrcp.f32 %v3949_v34 }
0x1586   :  { %5298 = vrcp.f32 %v3950_v35 }
0x158f   :  { %v5297_v46 = vpop.eup %5296 }
0x1590   :  { %v5299_v36 = vpop.eup %5298  ;;  %v3963_v45 = vmul.f32 %v5297_v46, %v3959_v43 }
0x1591   :  { %v3964_v47 = vmul.f32 %v5299_v36, %v3960_v44 }
0x15f3   :  { %v3968_v48 = vpop.permute.xlu0 %3967 }
0x15f4   :  { %v3970_v37 = vpop.permute.xlu1 %3969  ;;  %v3973_v38 = vmul.f32 %v5297_v46, %v3968_v48 }
0x15f5   :  { %v3974_v42 = vmul.f32 %v5299_v36, %v3970_v37 }
0x15f6   :  { %3977 = vrot.lane.b32.xlu0 %v3973_v38, %s5434_s26 }
0x15f7   :  { %3979 = vrot.lane.b32.xlu1 %v3974_v42, %s5434_s26 }
0x1668   :  { %v3978_v49 = vpop.permute.xlu0 %3977 }
0x1669   :  { %v3980_v50 = vpop.permute.xlu1 %3979  ;;  %v3983_v51 = vadd.f32 %v3978_v49, %v3963_v45 }
0x166a   :  { %v3984_v52 = vadd.f32 %v3980_v50, %v3964_v47 }
0x166b   :  { %5300 = vtanh.f32 %v3983_v51 }
0x166c   :  { %5302 = vtanh.f32 %v3984_v52 }
0x1675   :  { %v5301_v53 = vpop.eup %5300 }
0x1676   :  { %v5303_v55 = vpop.eup %5302  ;;  %3989 = vrot.lane.b32.xlu0 %v5301_v53, %s5423_s15 }
0x1677   :  { %3991 = vrot.lane.b32.xlu1 %v5303_v55, %s5423_s15 }
0x167a   :  { %4006 = vrot.lane.b32.xlu0 %v5674_v41, %s5423_s15 }
0x167b   :  { %3998 = vrot.lane.b32.xlu1 %v5596_v0, %s5423_s15  ;;  %v4051_v0 = vrot.slane %v3984_v52, 7 }
0x167e   :  { %4009 = vrot.lane.b32.xlu0 %v3861_v18, %s5435_s1 }
0x167f   :  { %4001 = vrot.lane.b32.xlu1 %v5616_v39, %s5435_s1 }
0x16e8   :  { %v3990_v57 = vpop.permute.xlu0 %3989 }
0x16e9   :  { %v3992_v59 = vpop.permute.xlu1 %3991  ;;  %v3995_v60 = vmul.f32 %v5297_v46, %v3990_v57 }
0x16ea   :  { %v3996_v61 = vmul.f32 %v5299_v36, %v3992_v59 }
0x16eb   :  { %4039 = vrot.lane.b32.xlu1 %v3995_v60, %s5434_s26  ;;  %v4014_v2 = vrot.slane %v3995_v60, 7 }
0x16ec   :  { %v4038_v62 = vrot.slane %v3996_v61, 7  ;;  %v4007_v63 = vpop.permute.xlu0 %4006  ;;  %v4015_v1 = vrot.slane %v3996_v61, 6 }
0x16ed   :  { %v3999_v3 = vpop.permute.xlu1 %3998  ;;  %v4023_v39 = vsel %vm2883_vm1, %v5656_v4, %v4007_v63 }
0x16ee   :  { %4041 = vrot.lane.b32.xlu0 %v4038_v62, %s5434_s26  ;;  %v4018_v5 = vsel %vm2883_vm1, %v5577_v23, %v3999_v3  ;;  %v4016_v7 = vsel %vm3022_vm2, %v4015_v1, %v4014_v2 }
0x16ef   :  { %4052 = vrot.lane.b32.xlu1 %v3983_v51, %s5435_s1 }
0x16f0   :  { %v4010_v41 = vpop.permute.xlu0 %4009 }
0x16f1   :  { %v4002_v6 = vpop.permute.xlu1 %4001  ;;  %v4024_v8 = vsel %vm4019_vm3, %v4023_v39, %v4010_v41 }
0x16f2   :  { %v4020_v9 = vsel %vm4019_vm3, %v4018_v5, %v4002_v6  ;;  %v4025_v10 = vsel %vm4021_vm4, %v4024_v8, %v4016_v7  ;;  %4054 = vrot.lane.b32.xlu0 %v4051_v0, %s5435_s1 }
0x16f3   :  { %v4022_v11 = vsel %vm4021_vm4, %v4020_v9, %v5636_v20 }
0x16f4   :  { %v4028_v12 = vcombine.low %v4022_v11, %v4025_v10 }
0x16f6   :  { %4375 = vst.sshfl [vmem:[%s5746_s6] sm:$0x33 pattern:$0x76325410] %v4028_v12 }
0x175d   :  { %v4040_v4 = vpop.permute.xlu1 %4039 }
0x175e   :  { %4046 = vst.msk [vmem:[#allocation8 - $0x7] sm:$0x80] %vm4045_vm5, %v4040_v4 }
0x1760   :  { %v4042_v23 = vpop.permute.xlu0 %4041 }
0x1761   :  { %4048 = vst.msk [vmem:[#allocation8 + $0x1] sm:$0x1] %vm4047_vm6, %v4042_v23  ;;  %v4053_v54 = vpop.permute.xlu1 %4052 }
0x1762   :  { %4058 = vst.msk [vmem:[#allocation9 - $0x7] sm:$0x80] %vm4045_vm5, %v4053_v54 }
0x1763   :  { %5381 = shalt.err (!%p5378_p0)
}
0x1764   :  { %s5382_s12 = scalar_lea.hbm %s5747_s7, 32 }
0x1765   :  { %p5383_p1 = scmp.ne.s32.totalorder %s5747_s7, %s5382_s12  ;;  %p5386_p2 = scmp.lt.u32.totalorder %s5382_s12, %s5747_s7 }
0x1767   :  { %p5388_p3 = pnand %p5386_p2, %p5383_p1 }
0x1769   :  { %5391 = shalt.err (!%p5388_p3)
}
0x176a   :  { %4071 = dma.vmem_to_hbm [thread:$0]  %s4069_s28, 32, %s5747_s7, [#allocation4]   ;;  %v4055_v20 = vpop.permute.xlu0 %4054 }
0x176b   :  { %4059 = vst.msk [vmem:[#allocation9 + $0x1] sm:$0x1] %vm4047_vm6, %v4055_v20  ;;  %s5392_s21 = scalar_lea.vmem %s4079_s9, 32  ;;  %p5397_p5 = scmp.lt.s32.totalorder %s4079_s9, %s4079_s9 }
0x176c   :  { %p5393_p4 = scmp.ne.s32.totalorder %s4079_s9, %s5392_s21  ;;  %p5398_p6 = scmp.lt.s32.totalorder %s5392_s21, %s5392_s21 }
0x176e   :  { %p5399_p7 = por %p5398_p6, %p5397_p5 }
0x1770   :  { %p5400_p8 = pnand %p5399_p7, %p5393_p4 }
0x1772   :  { %5403 = shalt.err (!%p5400_p8)
}
0x1773   :  { %s5404_s22 = scalar_lea.hbm %s5748_s8, 32 }
0x1774   :  { %p5405_p9 = scmp.ne.s32.totalorder %s5748_s8, %s5404_s22  ;;  %p5408_p10 = scmp.lt.u32.totalorder %s5404_s22, %s5748_s8 }
0x1776   :  { %p5410_p11 = pnand %p5408_p10, %p5405_p9 }
0x1778   :  { %5413 = shalt.err (!%p5410_p11)
}
0x1779   :  { %4081 = dma.vmem_to_hbm [thread:$0]  %s4079_s9, 32, %s5748_s8, [#allocation10]  }
0x177a   :  { %5418 = dma.done.wait [#allocation4], 32  }
0x177b   :  { %5419 = vsyncadd [#allocation4], 4294967264 }
0x177c   :  { %5420 = dma.done.wait [#allocation10], 32  }
0x177d   :  { %5421 = vsyncadd [#allocation10], 4294967264 }
0x177e   :  { %4090 = vsyncpa [#allocation3], 1 }
0x177f   :  { %4091 = vsyncpa [#allocation6], 1 }
0x1780   :  { %4092 = vsyncpa [#allocation4], 1 }
0x1781   :  { %4093 = vsyncpa [#allocation10], 1 }

</bundles_post_ra>
